<compile_context>
chip_gen: v7x
topology: tpu7x:2x2x1
jax: 0.10.0
libtpu: 0.0.40
codegen_flags: <defaults>
</compile_context>

<pallas_src>
import jax
import jax.numpy as jnp
from jax import lax
from jax.experimental import pallas as pl
from jax.experimental.pallas import tpu as pltpu

EPS = 1e-5
LANE = 128


def _round_up(c, m=LANE):
    return ((c + m - 1) // m) * m


def bottleneck_kernel(x_ref, w1_ref, w2_ref, w3_ref,
                      g1_ref, b1_ref, g2_ref, b2_ref, g3_ref, b3_ref,
                      o_ref, pad_ref):
    N, H, W, C = x_ref.shape          # C  = lane-padded inplanes (== out channels)
    Wd = w1_ref.shape[1]              # Wd = lane-padded bottleneck width
    M = N * H * W

    def bn(h, g, b, relu):
        # nn.BatchNorm2d training mode: batch stats over (N,H,W), biased var.
        # Two-pass variance for numerical robustness.
        mu = jnp.mean(h, axis=0, keepdims=True)
        d = h - mu
        var = jnp.mean(d * d, axis=0, keepdims=True)
        y = d * lax.rsqrt(var + EPS) * g + b
        return jnp.maximum(y, 0.0) if relu else y

    # ---- conv1x1 -> BN1 -> ReLU  (bf16 MXU inputs, f32 accumulation) ----
    h1 = jnp.dot(x_ref[...].reshape(M, C).astype(jnp.bfloat16), w1_ref[...],
                 preferred_element_type=jnp.float32)
    h1 = bn(h1, g1_ref[...], b1_ref[...], relu=True)

    # ---- conv3x3 (stride=1, pad=1) as 9 accumulating MXU dots ----
    # pad_ref[kx] holds the W-shift-by-(kx-1) copy of h1 with a 1-row H halo
    # (zeroed).  The W shift is done once per kx in f32 via a zero-column
    # concat (same effect as pltpu.roll + iota mask, but direction-unambiguous
    # and outside the 9-dot loop), so every tap read below is a full-tile,
    # unmasked H-axis slice.
    zero_rows = jnp.zeros((3, N, 1, W, Wd), jnp.bfloat16)
    pad_ref[:, :, 0:1, :, :] = zero_rows
    pad_ref[:, :, H + 1:H + 2, :, :] = zero_rows

    h1_img = h1.reshape(N, H, W, Wd)
    zero_col = jnp.zeros((N, H, 1, Wd), jnp.float32)
    shifted = (
        jnp.concatenate([zero_col, h1_img[:, :, :W - 1, :]], axis=2),  # kx=0: in[w-1]
        h1_img,                                                        # kx=1: in[w]
        jnp.concatenate([h1_img[:, :, 1:, :], zero_col], axis=2),      # kx=2: in[w+1]
    )
    for kx in range(3):
        pad_ref[kx, :, 1:H + 1, :, :] = shifted[kx].astype(jnp.bfloat16)

    acc = jnp.zeros((M, Wd), jnp.float32)
    for ky in range(3):
        for kx in range(3):
            tap = pad_ref[kx, :, ky:ky + H, :, :]          # (N,H,W,Wd) bf16, aligned
            acc = acc + jnp.dot(tap.reshape(M, Wd), w2_ref[ky * 3 + kx],
                                preferred_element_type=jnp.float32)
    h2 = bn(acc, g2_ref[...], b2_ref[...], relu=True)

    # ---- conv1x1 -> BN3 ----
    h3 = jnp.dot(h2.astype(jnp.bfloat16), w3_ref[...],
                 preferred_element_type=jnp.float32)
    h3 = bn(h3, g3_ref[...], b3_ref[...], relu=False)

    # ---- residual add (reload identity here: bounds its live range) + ReLU ----
    o_ref[...] = jnp.maximum(h3.reshape(N, H, W, C) + x_ref[...], 0.0)


def prepare_params(w1_oihw, w2_oihw, w3_oihw, g1, b1, g2, b2, g3, b3):
    """One-time weight/affine preprocessing (transpose, pad to 128 lanes, bf16)."""
    width, cin = w1_oihw.shape[0], w1_oihw.shape[1]
    cout = w3_oihw.shape[0]
    assert cout == cin, "identity shortcut requires planes*expansion == inplanes"
    cp, wp = _round_up(cin), _round_up(width)

    w1 = jnp.transpose(w1_oihw[:, :, 0, 0], (1, 0))                       # (Cin, width)
    w1 = jnp.pad(w1, ((0, cp - cin), (0, wp - width))).astype(jnp.bfloat16)

    w2 = jnp.transpose(w2_oihw, (2, 3, 1, 0)).reshape(9, width, width)    # (tap, I, O)
    w2 = jnp.pad(w2, ((0, 0), (0, wp - width), (0, wp - width))).astype(jnp.bfloat16)

    w3 = jnp.transpose(w3_oihw[:, :, 0, 0], (1, 0))                       # (width, Cout)
    w3 = jnp.pad(w3, ((0, wp - width), (0, cp - cout))).astype(jnp.bfloat16)

    def pad_vec(v, n):
        # Zero pads keep the padded channels exactly zero through BN.
        return jnp.pad(v.astype(jnp.float32), (0, n - v.shape[0])).reshape(1, n)

    return dict(w1=w1, w2=w2, w3=w3,
                g1=pad_vec(g1, wp), b1=pad_vec(b1, wp),
                g2=pad_vec(g2, wp), b2=pad_vec(b2, wp),
                g3=pad_vec(g3, cp), b3=pad_vec(b3, cp),
                cin=cin, cout=cout, cp=cp, wp=wp)


def bottleneck_forward_nhwc(x_nhwc, params):
    """Fused Bottleneck forward on NHWC input (stride=1, downsample=None,
    training-mode BN). Returns NHWC output."""
    N, H, W, cin = x_nhwc.shape
    cp, wp = params["cp"], params["wp"]
    x = x_nhwc.astype(jnp.float32)
    if cp != cin:
        x = jnp.pad(x, ((0, 0), (0, 0), (0, 0), (0, cp - cin)))

    M = N * H * W
    flops = 2 * M * (cp * wp + 9 * wp * wp + wp * cp)
    bytes_accessed = (x.size + M * cp) * 4 + \
        (params["w1"].size + params["w2"].size + params["w3"].size) * 2

    vmem = pl.BlockSpec(memory_space=pltpu.MemorySpace.VMEM)
    out = pl.pallas_call(
        bottleneck_kernel,
        out_shape=jax.ShapeDtypeStruct((N, H, W, cp), jnp.float32),
        in_specs=[vmem] * 10,
        out_specs=vmem,
        scratch_shapes=[
            # Three W-shifted, H-halo'd bf16 copies of the BN1 output.
            pltpu.VMEM((3, N, H + 2, W, wp), jnp.bfloat16),
        ],
        compiler_params=pltpu.CompilerParams(vmem_limit_bytes=32 * 1024 * 1024),
        cost_estimate=pl.CostEstimate(flops=flops, transcendentals=0,
                                      bytes_accessed=bytes_accessed),
    )(x, params["w1"], params["w2"], params["w3"],
      params["g1"], params["b1"], params["g2"], params["b2"],
      params["g3"], params["b3"])

    return out[..., :params["cout"]]


def bottleneck_reference_nhwc(x_nhwc, w1_oihw, w2_oihw, w3_oihw,
                              g1, b1, g2, b2, g3, b3, mm_dtype=jnp.float32):
    """Pure-JAX NHWC reference. mm_dtype=bfloat16 mirrors the kernel's MXU precision."""
    x = x_nhwc.astype(jnp.float32)
    w1 = jnp.transpose(w1_oihw[:, :, 0, 0], (1, 0))
    w2 = jnp.transpose(w2_oihw, (2, 3, 1, 0))                             # HWIO
    w3 = jnp.transpose(w3_oihw[:, :, 0, 0], (1, 0))

    def bn(h, g, b):
        mu = jnp.mean(h, axis=(0, 1, 2), keepdims=True)
        var = jnp.var(h, axis=(0, 1, 2), keepdims=True)
        return ((h - mu) * lax.rsqrt(var + EPS) * g.reshape(1, 1, 1, -1)
                + b.reshape(1, 1, 1, -1))

    def mm(a, w):
        return jnp.einsum('nhwc,cd->nhwd', a.astype(mm_dtype), w.astype(mm_dtype),
                          preferred_element_type=jnp.float32)

    h = jax.nn.relu(bn(mm(x, w1), g1, b1))
    h = lax.conv_general_dilated(h.astype(mm_dtype), w2.astype(mm_dtype),
                                 window_strides=(1, 1), padding='SAME',
                                 dimension_numbers=('NHWC', 'HWIO', 'NHWC'),
                                 preferred_element_type=jnp.float32)
    h = jax.nn.relu(bn(h, g2, b2))
    h = bn(mm(h, w3), g3, b3)
    return jax.nn.relu(h + x)


if __name__ == "__main__":
    # Bottleneck(inplanes=16, planes=4): width=4, expansion*planes=16==inplanes,
    # so the identity shortcut (downsample=None, stride=1) is valid.
    N, H, W = 2, 8, 8
    inplanes, planes = 16, 4
    width = planes           # base_width=64, groups=1
    cout = planes * 4        # expansion = 4

    key = jax.random.PRNGKey(0)
    kx, k1, k2, k3, kg1, kb1, kg2, kb2, kg3, kb3 = jax.random.split(key, 10)

    # PyTorch-layout parameters / input.
    x_nchw = jax.random.normal(kx, (N, inplanes, H, W), jnp.float32)       # NCHW
    w1 = 0.2 * jax.random.normal(k1, (width, inplanes, 1, 1), jnp.float32)  # OIHW
    w2 = 0.2 * jax.random.normal(k2, (width, width, 3, 3), jnp.float32)
    w3 = 0.2 * jax.random.normal(k3, (cout, width, 1, 1), jnp.float32)

    g1 = 1.0 + 0.1 * jax.random.normal(kg1, (width,), jnp.float32)
    b1 = 0.1 * jax.random.normal(kb1, (width,), jnp.float32)
    g2 = 1.0 + 0.1 * jax.random.normal(kg2, (width,), jnp.float32)
    b2 = 0.1 * jax.random.normal(kb2, (width,), jnp.float32)
    g3 = 1.0 + 0.1 * jax.random.normal(kg3, (cout,), jnp.float32)
    b3 = 0.1 * jax.random.normal(kb3, (cout,), jnp.float32)

    # One-time prep (hoisted out of the per-call path): weights padded/bf16,
    # activations converted to NHWC once.
    params = prepare_params(w1, w2, w3, g1, b1, g2, b2, g3, b3)
    x_nhwc = jnp.transpose(x_nchw, (0, 2, 3, 1))

    fwd = jax.jit(lambda xx: bottleneck_forward_nhwc(xx, params))
    out = jax.block_until_ready(fwd(x_nhwc))
    assert out.shape == (N, H, W, cout)

    # Tight check vs a reference using the kernel's mixed precision
    # (bf16 MXU inputs, f32 accumulation / BN / residual).
    ref_mixed = jax.block_until_ready(
        bottleneck_reference_nhwc(x_nhwc, w1, w2, w3, g1, b1, g2, b2, g3, b3,
                                  mm_dtype=jnp.bfloat16))
    err_mixed = jnp.max(jnp.abs(out - ref_mixed))
    assert jnp.allclose(out, ref_mixed, atol=2e-2, rtol=2e-2), \
        f"mixed-precision mismatch, max abs err {err_mixed}"

    # Loose check vs the full-f32 reference (bounds the bf16 matmul error).
    ref_f32 = jax.block_until_ready(
        bottleneck_reference_nhwc(x_nhwc, w1, w2, w3, g1, b1, g2, b2, g3, b3,
                                  mm_dtype=jnp.float32))
    err_f32 = jnp.max(jnp.abs(out - ref_f32))
    assert jnp.allclose(out, ref_f32, atol=1.5e-1, rtol=1.5e-1), \
        f"f32 reference mismatch, max abs err {err_f32}"

    print("KERNEL_OK")
</pallas_src>

<mosaic_0001>
module attributes {stable_mosaic.version = 11 : i64} {
  func.func @bottleneck_kernel(%arg0: memref<2x8x8x128xf32, #tpu.memory_space<vmem>>, %arg1: memref<128x128xbf16, #tpu.memory_space<vmem>>, %arg2: memref<9x128x128xbf16, #tpu.memory_space<vmem>>, %arg3: memref<128x128xbf16, #tpu.memory_space<vmem>>, %arg4: memref<1x128xf32, #tpu.memory_space<vmem>>, %arg5: memref<1x128xf32, #tpu.memory_space<vmem>>, %arg6: memref<1x128xf32, #tpu.memory_space<vmem>>, %arg7: memref<1x128xf32, #tpu.memory_space<vmem>>, %arg8: memref<1x128xf32, #tpu.memory_space<vmem>>, %arg9: memref<1x128xf32, #tpu.memory_space<vmem>>, %arg10: memref<2x8x8x128xf32, #tpu.memory_space<vmem>>, %arg11: memref<3x2x10x8x128xbf16, #tpu.memory_space<vmem>>) attributes {dimension_semantics = [], scalar_prefetch = 0 : i64, scratch_operands = 1 : i64, tpu.core_type = #tpu.core_type<tc>} {
    %c0 = arith.constant 0 : index
    %c0_0 = arith.constant 0 : index
    %c0_1 = arith.constant 0 : index
    %c0_2 = arith.constant 0 : index
    %0 = vector.load %arg0[%c0, %c0_0, %c0_1, %c0_2] : memref<2x8x8x128xf32, #tpu.memory_space<vmem>>, vector<2x8x8x128xf32>
    %1 = vector.shape_cast %0 : vector<2x8x8x128xf32> to vector<128x128xf32>
    %2 = arith.truncf %1 : vector<128x128xf32> to vector<128x128xbf16>
    %c0_3 = arith.constant 0 : index
    %c0_4 = arith.constant 0 : index
    %3 = vector.load %arg1[%c0_3, %c0_4] : memref<128x128xbf16, #tpu.memory_space<vmem>>, vector<128x128xbf16>
    %cst = arith.constant dense<0.000000e+00> : vector<128x128xf32>
    %4 = tpu.matmul %2, %3, %cst {dimension_numbers = #tpu.dot_dimension_numbers<[1], [0], [0], [1], [0, 0, 1, 1], [], []>} : vector<128x128xbf16>, vector<128x128xbf16>, vector<128x128xf32> -> vector<128x128xf32>
    %c0_5 = arith.constant 0 : index
    %c0_6 = arith.constant 0 : index
    %5 = vector.load %arg4[%c0_5, %c0_6] : memref<1x128xf32, #tpu.memory_space<vmem>>, vector<1x128xf32>
    %c0_7 = arith.constant 0 : index
    %c0_8 = arith.constant 0 : index
    %6 = vector.load %arg5[%c0_7, %c0_8] : memref<1x128xf32, #tpu.memory_space<vmem>>, vector<1x128xf32>
    %cst_9 = arith.constant dense<0.000000e+00> : vector<128xf32>
    %7 = vector.multi_reduction <add>, %4, %cst_9 [0] : vector<128x128xf32> to vector<128xf32>
    %8 = vector.shape_cast %7 : vector<128xf32> to vector<1x128xf32>
    %cst_10 = arith.constant 1.280000e+02 : f32
    %9 = vector.broadcast %cst_10 : f32 to vector<1x128xf32>
    %10 = arith.divf %8, %9 : vector<1x128xf32>
    %11 = vector.broadcast %10 : vector<1x128xf32> to vector<128x128xf32>
    %12 = arith.subf %4, %11 : vector<128x128xf32>
    %13 = arith.mulf %12, %12 : vector<128x128xf32>
    %cst_11 = arith.constant dense<0.000000e+00> : vector<128xf32>
    %14 = vector.multi_reduction <add>, %13, %cst_11 [0] : vector<128x128xf32> to vector<128xf32>
    %15 = vector.shape_cast %14 : vector<128xf32> to vector<1x128xf32>
    %cst_12 = arith.constant 1.280000e+02 : f32
    %16 = vector.broadcast %cst_12 : f32 to vector<1x128xf32>
    %17 = arith.divf %15, %16 : vector<1x128xf32>
    %cst_13 = arith.constant 9.99999974E-6 : f32
    %18 = vector.broadcast %cst_13 : f32 to vector<1x128xf32>
    %19 = arith.addf %17, %18 : vector<1x128xf32>
    %20 = math.rsqrt %19 : vector<1x128xf32>
    %21 = vector.broadcast %20 : vector<1x128xf32> to vector<128x128xf32>
    %22 = arith.mulf %12, %21 : vector<128x128xf32>
    %23 = vector.broadcast %5 : vector<1x128xf32> to vector<128x128xf32>
    %24 = arith.mulf %22, %23 : vector<128x128xf32>
    %25 = vector.broadcast %6 : vector<1x128xf32> to vector<128x128xf32>
    %26 = arith.addf %24, %25 : vector<128x128xf32>
    %cst_14 = arith.constant 0.000000e+00 : f32
    %27 = vector.broadcast %cst_14 : f32 to vector<128x128xf32>
    %28 = arith.maximumf %26, %27 : vector<128x128xf32>
    %cst_15 = arith.constant 0.000000e+00 : bf16
    %29 = vector.broadcast %cst_15 : bf16 to vector<3x2x1x8x128xbf16>
    %c0_16 = arith.constant 0 : index
    %c0_17 = arith.constant 0 : index
    %c0_18 = arith.constant 0 : index
    %c0_19 = arith.constant 0 : index
    %c0_20 = arith.constant 0 : index
    %30 = vector.load %arg11[%c0_16, %c0_17, %c0_18, %c0_19, %c0_20] : memref<3x2x10x8x128xbf16, #tpu.memory_space<vmem>>, vector<3x2x1x8x128xbf16>
    tpu.vector_store %arg11[%c0_16, %c0_17, %c0_18, %c0_19, %c0_20], %29 {strides = array<i32>} : memref<3x2x10x8x128xbf16, #tpu.memory_space<vmem>>, vector<3x2x1x8x128xbf16>,
    %c0_21 = arith.constant 0 : index
    %c0_22 = arith.constant 0 : index
    %c9 = arith.constant 9 : index
    %c0_23 = arith.constant 0 : index
    %c0_24 = arith.constant 0 : index
    %31 = vector.load %arg11[%c0_21, %c0_22, %c9, %c0_23, %c0_24] : memref<3x2x10x8x128xbf16, #tpu.memory_space<vmem>>, vector<3x2x1x8x128xbf16>
    tpu.vector_store %arg11[%c0_21, %c0_22, %c9, %c0_23, %c0_24], %29 {strides = array<i32>} : memref<3x2x10x8x128xbf16, #tpu.memory_space<vmem>>, vector<3x2x1x8x128xbf16>,
    %32 = vector.shape_cast %28 : vector<128x128xf32> to vector<2x8x8x128xf32>
    %cst_25 = arith.constant 0.000000e+00 : f32
    %33 = vector.broadcast %cst_25 : f32 to vector<2x8x1x128xf32>
    %34 = vector.extract_strided_slice %32 {offsets = [0, 0, 0, 0], sizes = [2, 8, 7, 128], strides = [1, 1, 1, 1]} : vector<2x8x8x128xf32> to vector<2x8x7x128xf32>
    %35 = tpu.concatenate %33, %34 in 2 : vector<2x8x1x128xf32>, vector<2x8x7x128xf32> -> vector<2x8x8x128xf32>
    %36 = vector.extract_strided_slice %32 {offsets = [0, 0, 1, 0], sizes = [2, 8, 7, 128], strides = [1, 1, 1, 1]} : vector<2x8x8x128xf32> to vector<2x8x7x128xf32>
    %37 = tpu.concatenate %36, %33 in 2 : vector<2x8x7x128xf32>, vector<2x8x1x128xf32> -> vector<2x8x8x128xf32>
    %38 = arith.truncf %35 : vector<2x8x8x128xf32> to vector<2x8x8x128xbf16>
    %c0_26 = arith.constant 0 : index
    %c0_27 = arith.constant 0 : index
    %c1 = arith.constant 1 : index
    %c0_28 = arith.constant 0 : index
    %c0_29 = arith.constant 0 : index
    %39 = vector.load %arg11[%c0_26, %c0_27, %c1, %c0_28, %c0_29] : memref<3x2x10x8x128xbf16, #tpu.memory_space<vmem>>, vector<1x2x8x8x128xbf16>
    %40 = vector.shape_cast %39 : vector<1x2x8x8x128xbf16> to vector<2x8x8x128xbf16>
    %41 = vector.shape_cast %38 : vector<2x8x8x128xbf16> to vector<1x2x8x8x128xbf16>
    tpu.vector_store %arg11[%c0_26, %c0_27, %c1, %c0_28, %c0_29], %41 {strides = array<i32>} : memref<3x2x10x8x128xbf16, #tpu.memory_space<vmem>>, vector<1x2x8x8x128xbf16>,
    %42 = arith.truncf %32 : vector<2x8x8x128xf32> to vector<2x8x8x128xbf16>
    %c1_30 = arith.constant 1 : index
    %c0_31 = arith.constant 0 : index
    %c1_32 = arith.constant 1 : index
    %c0_33 = arith.constant 0 : index
    %c0_34 = arith.constant 0 : index
    %43 = vector.load %arg11[%c1_30, %c0_31, %c1_32, %c0_33, %c0_34] : memref<3x2x10x8x128xbf16, #tpu.memory_space<vmem>>, vector<1x2x8x8x128xbf16>
    %44 = vector.shape_cast %43 : vector<1x2x8x8x128xbf16> to vector<2x8x8x128xbf16>
    %45 = vector.shape_cast %42 : vector<2x8x8x128xbf16> to vector<1x2x8x8x128xbf16>
    tpu.vector_store %arg11[%c1_30, %c0_31, %c1_32, %c0_33, %c0_34], %45 {strides = array<i32>} : memref<3x2x10x8x128xbf16, #tpu.memory_space<vmem>>, vector<1x2x8x8x128xbf16>,
    %46 = arith.truncf %37 : vector<2x8x8x128xf32> to vector<2x8x8x128xbf16>
    %c2 = arith.constant 2 : index
    %c0_35 = arith.constant 0 : index
    %c1_36 = arith.constant 1 : index
    %c0_37 = arith.constant 0 : index
    %c0_38 = arith.constant 0 : index
    %47 = vector.load %arg11[%c2, %c0_35, %c1_36, %c0_37, %c0_38] : memref<3x2x10x8x128xbf16, #tpu.memory_space<vmem>>, vector<1x2x8x8x128xbf16>
    %48 = vector.shape_cast %47 : vector<1x2x8x8x128xbf16> to vector<2x8x8x128xbf16>
    %49 = vector.shape_cast %46 : vector<2x8x8x128xbf16> to vector<1x2x8x8x128xbf16>
    tpu.vector_store %arg11[%c2, %c0_35, %c1_36, %c0_37, %c0_38], %49 {strides = array<i32>} : memref<3x2x10x8x128xbf16, #tpu.memory_space<vmem>>, vector<1x2x8x8x128xbf16>,
    %cst_39 = arith.constant 0.000000e+00 : f32
    %50 = vector.broadcast %cst_39 : f32 to vector<128x128xf32>
    %c0_40 = arith.constant 0 : index
    %c0_41 = arith.constant 0 : index
    %c0_42 = arith.constant 0 : index
    %c0_43 = arith.constant 0 : index
    %c0_44 = arith.constant 0 : index
    %51 = vector.load %arg11[%c0_40, %c0_41, %c0_42, %c0_43, %c0_44] : memref<3x2x10x8x128xbf16, #tpu.memory_space<vmem>>, vector<1x2x8x8x128xbf16>
    %52 = vector.shape_cast %51 : vector<1x2x8x8x128xbf16> to vector<2x8x8x128xbf16>
    %53 = vector.shape_cast %52 : vector<2x8x8x128xbf16> to vector<128x128xbf16>
    %c0_45 = arith.constant 0 : index
    %c0_46 = arith.constant 0 : index
    %c0_47 = arith.constant 0 : index
    %54 = vector.load %arg2[%c0_45, %c0_46, %c0_47] : memref<9x128x128xbf16, #tpu.memory_space<vmem>>, vector<1x128x128xbf16>
    %55 = vector.shape_cast %54 : vector<1x128x128xbf16> to vector<128x128xbf16>
    %cst_48 = arith.constant dense<0.000000e+00> : vector<128x128xf32>
    %56 = tpu.matmul %53, %55, %cst_48 {dimension_numbers = #tpu.dot_dimension_numbers<[1], [0], [0], [1], [0, 0, 1, 1], [], []>} : vector<128x128xbf16>, vector<128x128xbf16>, vector<128x128xf32> -> vector<128x128xf32>
    %57 = arith.addf %50, %56 : vector<128x128xf32>
    %c1_49 = arith.constant 1 : index
    %c0_50 = arith.constant 0 : index
    %c0_51 = arith.constant 0 : index
    %c0_52 = arith.constant 0 : index
    %c0_53 = arith.constant 0 : index
    %58 = vector.load %arg11[%c1_49, %c0_50, %c0_51, %c0_52, %c0_53] : memref<3x2x10x8x128xbf16, #tpu.memory_space<vmem>>, vector<1x2x8x8x128xbf16>
    %59 = vector.shape_cast %58 : vector<1x2x8x8x128xbf16> to vector<2x8x8x128xbf16>
    %60 = vector.shape_cast %59 : vector<2x8x8x128xbf16> to vector<128x128xbf16>
    %c1_54 = arith.constant 1 : index
    %c0_55 = arith.constant 0 : index
    %c0_56 = arith.constant 0 : index
    %61 = vector.load %arg2[%c1_54, %c0_55, %c0_56] : memref<9x128x128xbf16, #tpu.memory_space<vmem>>, vector<1x128x128xbf16>
    %62 = vector.shape_cast %61 : vector<1x128x128xbf16> to vector<128x128xbf16>
    %cst_57 = arith.constant dense<0.000000e+00> : vector<128x128xf32>
    %63 = tpu.matmul %60, %62, %cst_57 {dimension_numbers = #tpu.dot_dimension_numbers<[1], [0], [0], [1], [0, 0, 1, 1], [], []>} : vector<128x128xbf16>, vector<128x128xbf16>, vector<128x128xf32> -> vector<128x128xf32>
    %64 = arith.addf %57, %63 : vector<128x128xf32>
    %c2_58 = arith.constant 2 : index
    %c0_59 = arith.constant 0 : index
    %c0_60 = arith.constant 0 : index
    %c0_61 = arith.constant 0 : index
    %c0_62 = arith.constant 0 : index
    %65 = vector.load %arg11[%c2_58, %c0_59, %c0_60, %c0_61, %c0_62] : memref<3x2x10x8x128xbf16, #tpu.memory_space<vmem>>, vector<1x2x8x8x128xbf16>
    %66 = vector.shape_cast %65 : vector<1x2x8x8x128xbf16> to vector<2x8x8x128xbf16>
    %67 = vector.shape_cast %66 : vector<2x8x8x128xbf16> to vector<128x128xbf16>
    %c2_63 = arith.constant 2 : index
    %c0_64 = arith.constant 0 : index
    %c0_65 = arith.constant 0 : index
    %68 = vector.load %arg2[%c2_63, %c0_64, %c0_65] : memref<9x128x128xbf16, #tpu.memory_space<vmem>>, vector<1x128x128xbf16>
    %69 = vector.shape_cast %68 : vector<1x128x128xbf16> to vector<128x128xbf16>
    %cst_66 = arith.constant dense<0.000000e+00> : vector<128x128xf32>
    %70 = tpu.matmul %67, %69, %cst_66 {dimension_numbers = #tpu.dot_dimension_numbers<[1], [0], [0], [1], [0, 0, 1, 1], [], []>} : vector<128x128xbf16>, vector<128x128xbf16>, vector<128x128xf32> -> vector<128x128xf32>
    %71 = arith.addf %64, %70 : vector<128x128xf32>
    %c0_67 = arith.constant 0 : index
    %c0_68 = arith.constant 0 : index
    %c1_69 = arith.constant 1 : index
    %c0_70 = arith.constant 0 : index
    %c0_71 = arith.constant 0 : index
    %72 = vector.load %arg11[%c0_67, %c0_68, %c1_69, %c0_70, %c0_71] : memref<3x2x10x8x128xbf16, #tpu.memory_space<vmem>>, vector<1x2x8x8x128xbf16>
    %73 = vector.shape_cast %72 : vector<1x2x8x8x128xbf16> to vector<2x8x8x128xbf16>
    %74 = vector.shape_cast %73 : vector<2x8x8x128xbf16> to vector<128x128xbf16>
    %c3 = arith.constant 3 : index
    %c0_72 = arith.constant 0 : index
    %c0_73 = arith.constant 0 : index
    %75 = vector.load %arg2[%c3, %c0_72, %c0_73] : memref<9x128x128xbf16, #tpu.memory_space<vmem>>, vector<1x128x128xbf16>
    %76 = vector.shape_cast %75 : vector<1x128x128xbf16> to vector<128x128xbf16>
    %cst_74 = arith.constant dense<0.000000e+00> : vector<128x128xf32>
    %77 = tpu.matmul %74, %76, %cst_74 {dimension_numbers = #tpu.dot_dimension_numbers<[1], [0], [0], [1], [0, 0, 1, 1], [], []>} : vector<128x128xbf16>, vector<128x128xbf16>, vector<128x128xf32> -> vector<128x128xf32>
    %78 = arith.addf %71, %77 : vector<128x128xf32>
    %c1_75 = arith.constant 1 : index
    %c0_76 = arith.constant 0 : index
    %c1_77 = arith.constant 1 : index
    %c0_78 = arith.constant 0 : index
    %c0_79 = arith.constant 0 : index
    %79 = vector.load %arg11[%c1_75, %c0_76, %c1_77, %c0_78, %c0_79] : memref<3x2x10x8x128xbf16, #tpu.memory_space<vmem>>, vector<1x2x8x8x128xbf16>
    %80 = vector.shape_cast %79 : vector<1x2x8x8x128xbf16> to vector<2x8x8x128xbf16>
    %81 = vector.shape_cast %80 : vector<2x8x8x128xbf16> to vector<128x128xbf16>
    %c4 = arith.constant 4 : index
    %c0_80 = arith.constant 0 : index
    %c0_81 = arith.constant 0 : index
    %82 = vector.load %arg2[%c4, %c0_80, %c0_81] : memref<9x128x128xbf16, #tpu.memory_space<vmem>>, vector<1x128x128xbf16>
    %83 = vector.shape_cast %82 : vector<1x128x128xbf16> to vector<128x128xbf16>
    %cst_82 = arith.constant dense<0.000000e+00> : vector<128x128xf32>
    %84 = tpu.matmul %81, %83, %cst_82 {dimension_numbers = #tpu.dot_dimension_numbers<[1], [0], [0], [1], [0, 0, 1, 1], [], []>} : vector<128x128xbf16>, vector<128x128xbf16>, vector<128x128xf32> -> vector<128x128xf32>
    %85 = arith.addf %78, %84 : vector<128x128xf32>
    %c2_83 = arith.constant 2 : index
    %c0_84 = arith.constant 0 : index
    %c1_85 = arith.constant 1 : index
    %c0_86 = arith.constant 0 : index
    %c0_87 = arith.constant 0 : index
    %86 = vector.load %arg11[%c2_83, %c0_84, %c1_85, %c0_86, %c0_87] : memref<3x2x10x8x128xbf16, #tpu.memory_space<vmem>>, vector<1x2x8x8x128xbf16>
    %87 = vector.shape_cast %86 : vector<1x2x8x8x128xbf16> to vector<2x8x8x128xbf16>
    %88 = vector.shape_cast %87 : vector<2x8x8x128xbf16> to vector<128x128xbf16>
    %c5 = arith.constant 5 : index
    %c0_88 = arith.constant 0 : index
    %c0_89 = arith.constant 0 : index
    %89 = vector.load %arg2[%c5, %c0_88, %c0_89] : memref<9x128x128xbf16, #tpu.memory_space<vmem>>, vector<1x128x128xbf16>
    %90 = vector.shape_cast %89 : vector<1x128x128xbf16> to vector<128x128xbf16>
    %cst_90 = arith.constant dense<0.000000e+00> : vector<128x128xf32>
    %91 = tpu.matmul %88, %90, %cst_90 {dimension_numbers = #tpu.dot_dimension_numbers<[1], [0], [0], [1], [0, 0, 1, 1], [], []>} : vector<128x128xbf16>, vector<128x128xbf16>, vector<128x128xf32> -> vector<128x128xf32>
    %92 = arith.addf %85, %91 : vector<128x128xf32>
    %c0_91 = arith.constant 0 : index
    %c0_92 = arith.constant 0 : index
    %c2_93 = arith.constant 2 : index
    %c0_94 = arith.constant 0 : index
    %c0_95 = arith.constant 0 : index
    %93 = vector.load %arg11[%c0_91, %c0_92, %c2_93, %c0_94, %c0_95] : memref<3x2x10x8x128xbf16, #tpu.memory_space<vmem>>, vector<1x2x8x8x128xbf16>
    %94 = vector.shape_cast %93 : vector<1x2x8x8x128xbf16> to vector<2x8x8x128xbf16>
    %95 = vector.shape_cast %94 : vector<2x8x8x128xbf16> to vector<128x128xbf16>
    %c6 = arith.constant 6 : index
    %c0_96 = arith.constant 0 : index
    %c0_97 = arith.constant 0 : index
    %96 = vector.load %arg2[%c6, %c0_96, %c0_97] : memref<9x128x128xbf16, #tpu.memory_space<vmem>>, vector<1x128x128xbf16>
    %97 = vector.shape_cast %96 : vector<1x128x128xbf16> to vector<128x128xbf16>
    %cst_98 = arith.constant dense<0.000000e+00> : vector<128x128xf32>
    %98 = tpu.matmul %95, %97, %cst_98 {dimension_numbers = #tpu.dot_dimension_numbers<[1], [0], [0], [1], [0, 0, 1, 1], [], []>} : vector<128x128xbf16>, vector<128x128xbf16>, vector<128x128xf32> -> vector<128x128xf32>
    %99 = arith.addf %92, %98 : vector<128x128xf32>
    %c1_99 = arith.constant 1 : index
    %c0_100 = arith.constant 0 : index
    %c2_101 = arith.constant 2 : index
    %c0_102 = arith.constant 0 : index
    %c0_103 = arith.constant 0 : index
    %100 = vector.load %arg11[%c1_99, %c0_100, %c2_101, %c0_102, %c0_103] : memref<3x2x10x8x128xbf16, #tpu.memory_space<vmem>>, vector<1x2x8x8x128xbf16>
    %101 = vector.shape_cast %100 : vector<1x2x8x8x128xbf16> to vector<2x8x8x128xbf16>
    %102 = vector.shape_cast %101 : vector<2x8x8x128xbf16> to vector<128x128xbf16>
    %c7 = arith.constant 7 : index
    %c0_104 = arith.constant 0 : index
    %c0_105 = arith.constant 0 : index
    %103 = vector.load %arg2[%c7, %c0_104, %c0_105] : memref<9x128x128xbf16, #tpu.memory_space<vmem>>, vector<1x128x128xbf16>
    %104 = vector.shape_cast %103 : vector<1x128x128xbf16> to vector<128x128xbf16>
    %cst_106 = arith.constant dense<0.000000e+00> : vector<128x128xf32>
    %105 = tpu.matmul %102, %104, %cst_106 {dimension_numbers = #tpu.dot_dimension_numbers<[1], [0], [0], [1], [0, 0, 1, 1], [], []>} : vector<128x128xbf16>, vector<128x128xbf16>, vector<128x128xf32> -> vector<128x128xf32>
    %106 = arith.addf %99, %105 : vector<128x128xf32>
    %c2_107 = arith.constant 2 : index
    %c0_108 = arith.constant 0 : index
    %c2_109 = arith.constant 2 : index
    %c0_110 = arith.constant 0 : index
    %c0_111 = arith.constant 0 : index
    %107 = vector.load %arg11[%c2_107, %c0_108, %c2_109, %c0_110, %c0_111] : memref<3x2x10x8x128xbf16, #tpu.memory_space<vmem>>, vector<1x2x8x8x128xbf16>
    %108 = vector.shape_cast %107 : vector<1x2x8x8x128xbf16> to vector<2x8x8x128xbf16>
    %109 = vector.shape_cast %108 : vector<2x8x8x128xbf16> to vector<128x128xbf16>
    %c8 = arith.constant 8 : index
    %c0_112 = arith.constant 0 : index
    %c0_113 = arith.constant 0 : index
    %110 = vector.load %arg2[%c8, %c0_112, %c0_113] : memref<9x128x128xbf16, #tpu.memory_space<vmem>>, vector<1x128x128xbf16>
    %111 = vector.shape_cast %110 : vector<1x128x128xbf16> to vector<128x128xbf16>
    %cst_114 = arith.constant dense<0.000000e+00> : vector<128x128xf32>
    %112 = tpu.matmul %109, %111, %cst_114 {dimension_numbers = #tpu.dot_dimension_numbers<[1], [0], [0], [1], [0, 0, 1, 1], [], []>} : vector<128x128xbf16>, vector<128x128xbf16>, vector<128x128xf32> -> vector<128x128xf32>
    %113 = arith.addf %106, %112 : vector<128x128xf32>
    %c0_115 = arith.constant 0 : index
    %c0_116 = arith.constant 0 : index
    %114 = vector.load %arg6[%c0_115, %c0_116] : memref<1x128xf32, #tpu.memory_space<vmem>>, vector<1x128xf32>
    %c0_117 = arith.constant 0 : index
    %c0_118 = arith.constant 0 : index
    %115 = vector.load %arg7[%c0_117, %c0_118] : memref<1x128xf32, #tpu.memory_space<vmem>>, vector<1x128xf32>
    %cst_119 = arith.constant dense<0.000000e+00> : vector<128xf32>
    %116 = vector.multi_reduction <add>, %113, %cst_119 [0] : vector<128x128xf32> to vector<128xf32>
    %117 = vector.shape_cast %116 : vector<128xf32> to vector<1x128xf32>
    %cst_120 = arith.constant 1.280000e+02 : f32
    %118 = vector.broadcast %cst_120 : f32 to vector<1x128xf32>
    %119 = arith.divf %117, %118 : vector<1x128xf32>
    %120 = vector.broadcast %119 : vector<1x128xf32> to vector<128x128xf32>
    %121 = arith.subf %113, %120 : vector<128x128xf32>
    %122 = arith.mulf %121, %121 : vector<128x128xf32>
    %cst_121 = arith.constant dense<0.000000e+00> : vector<128xf32>
    %123 = vector.multi_reduction <add>, %122, %cst_121 [0] : vector<128x128xf32> to vector<128xf32>
    %124 = vector.shape_cast %123 : vector<128xf32> to vector<1x128xf32>
    %cst_122 = arith.constant 1.280000e+02 : f32
    %125 = vector.broadcast %cst_122 : f32 to vector<1x128xf32>
    %126 = arith.divf %124, %125 : vector<1x128xf32>
    %cst_123 = arith.constant 9.99999974E-6 : f32
    %127 = vector.broadcast %cst_123 : f32 to vector<1x128xf32>
    %128 = arith.addf %126, %127 : vector<1x128xf32>
    %129 = math.rsqrt %128 : vector<1x128xf32>
    %130 = vector.broadcast %129 : vector<1x128xf32> to vector<128x128xf32>
    %131 = arith.mulf %121, %130 : vector<128x128xf32>
    %132 = vector.broadcast %114 : vector<1x128xf32> to vector<128x128xf32>
    %133 = arith.mulf %131, %132 : vector<128x128xf32>
    %134 = vector.broadcast %115 : vector<1x128xf32> to vector<128x128xf32>
    %135 = arith.addf %133, %134 : vector<128x128xf32>
    %cst_124 = arith.constant 0.000000e+00 : f32
    %136 = vector.broadcast %cst_124 : f32 to vector<128x128xf32>
    %137 = arith.maximumf %135, %136 : vector<128x128xf32>
    %138 = arith.truncf %137 : vector<128x128xf32> to vector<128x128xbf16>
    %c0_125 = arith.constant 0 : index
    %c0_126 = arith.constant 0 : index
    %139 = vector.load %arg3[%c0_125, %c0_126] : memref<128x128xbf16, #tpu.memory_space<vmem>>, vector<128x128xbf16>
    %cst_127 = arith.constant dense<0.000000e+00> : vector<128x128xf32>
    %140 = tpu.matmul %138, %139, %cst_127 {dimension_numbers = #tpu.dot_dimension_numbers<[1], [0], [0], [1], [0, 0, 1, 1], [], []>} : vector<128x128xbf16>, vector<128x128xbf16>, vector<128x128xf32> -> vector<128x128xf32>
    %c0_128 = arith.constant 0 : index
    %c0_129 = arith.constant 0 : index
    %141 = vector.load %arg8[%c0_128, %c0_129] : memref<1x128xf32, #tpu.memory_space<vmem>>, vector<1x128xf32>
    %c0_130 = arith.constant 0 : index
    %c0_131 = arith.constant 0 : index
    %142 = vector.load %arg9[%c0_130, %c0_131] : memref<1x128xf32, #tpu.memory_space<vmem>>, vector<1x128xf32>
    %cst_132 = arith.constant dense<0.000000e+00> : vector<128xf32>
    %143 = vector.multi_reduction <add>, %140, %cst_132 [0] : vector<128x128xf32> to vector<128xf32>
    %144 = vector.shape_cast %143 : vector<128xf32> to vector<1x128xf32>
    %cst_133 = arith.constant 1.280000e+02 : f32
    %145 = vector.broadcast %cst_133 : f32 to vector<1x128xf32>
    %146 = arith.divf %144, %145 : vector<1x128xf32>
    %147 = vector.broadcast %146 : vector<1x128xf32> to vector<128x128xf32>
    %148 = arith.subf %140, %147 : vector<128x128xf32>
    %149 = arith.mulf %148, %148 : vector<128x128xf32>
    %cst_134 = arith.constant dense<0.000000e+00> : vector<128xf32>
    %150 = vector.multi_reduction <add>, %149, %cst_134 [0] : vector<128x128xf32> to vector<128xf32>
    %151 = vector.shape_cast %150 : vector<128xf32> to vector<1x128xf32>
    %cst_135 = arith.constant 1.280000e+02 : f32
    %152 = vector.broadcast %cst_135 : f32 to vector<1x128xf32>
    %153 = arith.divf %151, %152 : vector<1x128xf32>
    %cst_136 = arith.constant 9.99999974E-6 : f32
    %154 = vector.broadcast %cst_136 : f32 to vector<1x128xf32>
    %155 = arith.addf %153, %154 : vector<1x128xf32>
    %156 = math.rsqrt %155 : vector<1x128xf32>
    %157 = vector.broadcast %156 : vector<1x128xf32> to vector<128x128xf32>
    %158 = arith.mulf %148, %157 : vector<128x128xf32>
    %159 = vector.broadcast %141 : vector<1x128xf32> to vector<128x128xf32>
    %160 = arith.mulf %158, %159 : vector<128x128xf32>
    %161 = vector.broadcast %142 : vector<1x128xf32> to vector<128x128xf32>
    %162 = arith.addf %160, %161 : vector<128x128xf32>
    %163 = vector.shape_cast %162 : vector<128x128xf32> to vector<2x8x8x128xf32>
    %c0_137 = arith.constant 0 : index
    %c0_138 = arith.constant 0 : index
    %c0_139 = arith.constant 0 : index
    %c0_140 = arith.constant 0 : index
    %164 = vector.load %arg0[%c0_137, %c0_138, %c0_139, %c0_140] : memref<2x8x8x128xf32, #tpu.memory_space<vmem>>, vector<2x8x8x128xf32>
    %165 = arith.addf %163, %164 : vector<2x8x8x128xf32>
    %cst_141 = arith.constant 0.000000e+00 : f32
    %166 = vector.broadcast %cst_141 : f32 to vector<2x8x8x128xf32>
    %167 = arith.maximumf %165, %166 : vector<2x8x8x128xf32>
    %c0_142 = arith.constant 0 : index
    %c0_143 = arith.constant 0 : index
    %c0_144 = arith.constant 0 : index
    %c0_145 = arith.constant 0 : index
    %168 = vector.load %arg10[%c0_142, %c0_143, %c0_144, %c0_145] : memref<2x8x8x128xf32, #tpu.memory_space<vmem>>, vector<2x8x8x128xf32>
    tpu.vector_store %arg10[%c0_142, %c0_143, %c0_144, %c0_145], %167 {strides = array<i32>} : memref<2x8x8x128xf32, #tpu.memory_space<vmem>>, vector<2x8x8x128xf32>,
    return
  }
}

</mosaic_0001>

<bundles_post_ra>
// kernel: _lambda_.1
= control target key start
LH: loop header
LB: loop body
LE: loop exit
PB: predicated region body
PF: predicated region fallthrough
CT: control target
= control target key end

     0   :  { %15 = vsyncpa [#allocation4], 0  ;;  %s4984_s0 = inlined_call_operand.vmem [shape: f32[2,8,8,128], index: 0, kind: input, shape index: {}]   ;;  %s4985_s1 = inlined_call_operand.vmem [shape: bf16[128,128], index: 1, kind: input, shape index: {}]   ;;  %s4986_s2 = inlined_call_operand.hbm [shape: bf16[9,128,128], index: 2, kind: input, shape index: {}]   ;;  %s4987_s3 = inlined_call_operand.vmem [shape: bf16[128,128], index: 3, kind: input, shape index: {}]   ;;  %s4988_s4 = inlined_call_operand.vmem [shape: f32[1,128], index: 4, kind: input, shape index: {}]   ;;  %s4989_s5 = inlined_call_operand.vmem [shape: f32[1,128], index: 5, kind: input, shape index: {}]   ;;  %s4990_s6 = inlined_call_operand.vmem [shape: f32[1,128], index: 6, kind: input, shape index: {}]   ;;  %s4991_s7 = inlined_call_operand.vmem [shape: f32[1,128], index: 7, kind: input, shape index: {}]   ;;  %s4992_s8 = inlined_call_operand.vmem [shape: f32[1,128], index: 8, kind: input, shape index: {}]   ;;  %s4993_s9 = inlined_call_operand.vmem [shape: f32[1,128], index: 9, kind: input, shape index: {}]   ;;  %s4994_s10 = inlined_call_operand.hbm [shape: f32[2,8,8,128], index: 10, kind: output, shape index: {}]  }
   0x1   :  { %16 = vsyncpa [#allocation5], 0  ;;  %s4466_s13 = smov [#allocation3]   ;;  %s4418_s17 = scalar_lea.hbm %s4986_s2, 9216 }
   0x2   :  { %s26_s14 = sshll.u32 %s4466_s13, 4  ;;  %p4419_p0 = scmp.ne.s32.totalorder %s4986_s2, %s4418_s17  ;;  %s27_s14 = int_to_ptr.vmem [resolvable:$true] %s26_s14 }
   0x3   :  { %p4422_p1 = scmp.lt.u32.totalorder %s4418_s17, %s4986_s2 }
   0x5   :  { %p4424_p2 = pnand %p4422_p1, %p4419_p0 }
   0x7   :  { %4427 = shalt.err (!%p4424_p2)
}
   0x8   :  { %s4428_s22 = scalar_lea.vmem %s27_s14, 9216  ;;  %p4433_p4 = scmp.lt.s32.totalorder %s27_s14, %s27_s14 }
   0x9   :  { %p4429_p3 = scmp.ne.s32.totalorder %s27_s14, %s4428_s22  ;;  %p4434_p5 = scmp.lt.s32.totalorder %s4428_s22, %s4428_s22 }
   0xb   :  { %p4435_p6 = por %p4434_p5, %p4433_p4 }
   0xd   :  { %p4436_p7 = pnand %p4435_p6, %p4429_p3 }
   0xf   :  { %4439 = shalt.err (!%p4436_p7)
}
  0x10   :  { %s4467_s23 = smov 64   ;;  %s4468_s24 = smov 4  }
  0x11   :  { %32 = dma.hbm_to_vmem [thread:$0]  %s4986_s2, 9216, %s27_s14, [#allocation4], %s4467_s23, %s4467_s23, %s4468_s24  }
  0x12   :  { %4462 = dma.done.wait [#allocation4], 9216  }
  0x13   :  { %4463 = vsyncadd [#allocation4], 4294958080  ;;  %v4252_v0 = vld [vmem:[%s4985_s1] sm:$0xff]   ;;  %v4253_v1 = vld [vmem:[%s4985_s1 + $0x8] sm:$0xff]   ;;  %vm454_vm0 = vcmask 1040384   ;;  %vm503_vm1 = vcmask 1046528  }
  0x14   :  { %3765 = vmatprep.subr.bf16.mxu0 %v4252_v0  ;;  %v4254_v2 = vld [vmem:[%s4985_s1 + $0x10] sm:$0xff]   ;;  %v4255_v3 = vld [vmem:[%s4985_s1 + $0x18] sm:$0xff]   ;;  %v51_v4 = vld [vmem:[%s4984_s0] sm:$0xff] }
  0x15   :  { %3766 = vmatpush3.bf16.msra.mxu0 %v4252_v0  ;;  %v52_v5 = vld [vmem:[%s4984_s0 + $0x8] sm:$0xff]  ;;  %v4256_v7 = vld [vmem:[%s4985_s1 + $0x20] sm:$0xff]   ;;  %v4258_v9 = vld [vmem:[%s4985_s1 + $0x30] sm:$0xff]   ;;  %v4469_v0 = vmov 0  }
  0x16   :  { %3767 = vmatprep.subr.bf16.mxu0 %v4253_v1  ;;  %v67_v6 = vpack.c.bf16 %v52_v5, %v51_v4  ;;  %v4257_v8 = vld [vmem:[%s4985_s1 + $0x28] sm:$0xff]   ;;  %v4259_v10 = vld [vmem:[%s4985_s1 + $0x38] sm:$0xff]   ;;  %v53_v11 = vld [vmem:[%s4984_s0 + $0x10] sm:$0xff]  ;;  %395 = vst [vmem:[#allocation2 + $0x50] sm:$0xf] %v4469_v0 }
  0x17   :  { %v54_v12 = vld [vmem:[%s4984_s0 + $0x18] sm:$0xff]  ;;  %v55_v13 = vld [vmem:[%s4984_s0 + $0x20] sm:$0xff]  ;;  %v56_v14 = vld [vmem:[%s4984_s0 + $0x28] sm:$0xff]  ;;  %393 = vst [vmem:[#allocation2] sm:$0xf] %v4469_v0 }
  0x18   :  { %3781 = vmatprep.mubr.bf16.mxu0 %v67_v6  ;;  %v68_v15 = vpack.c.bf16 %v54_v12, %v53_v11  ;;  %v69_v16 = vpack.c.bf16 %v56_v14, %v55_v13  ;;  %v57_v17 = vld [vmem:[%s4984_s0 + $0x30] sm:$0xff]  ;;  %v58_v18 = vld [vmem:[%s4984_s0 + $0x38] sm:$0xff]  ;;  %v59_v19 = vld [vmem:[%s4984_s0 + $0x40] sm:$0xff]  ;;  %394 = vst [vmem:[#allocation2 + $0x28] sm:$0xf] %v4469_v0 }
  0x19   :  { %3768 = vmatpush3.bf16.msra.mxu0 %v4253_v1  ;;  %v60_v20 = vld [vmem:[%s4984_s0 + $0x48] sm:$0xff]  ;;  %v70_v21 = vpack.c.bf16 %v58_v18, %v57_v17  ;;  %v61_v23 = vld [vmem:[%s4984_s0 + $0x50] sm:$0xff]  ;;  %v62_v24 = vld [vmem:[%s4984_s0 + $0x58] sm:$0xff]  ;;  %396 = vst [vmem:[#allocation2 + $0x78] sm:$0xf] %v4469_v0 }
  0x1a   :  { %3769 = vmatprep.subr.bf16.mxu0 %v4254_v2  ;;  %v71_v22 = vpack.c.bf16 %v60_v20, %v59_v19  ;;  %v63_v25 = vld [vmem:[%s4984_s0 + $0x60] sm:$0xff]  ;;  %v64_v26 = vld [vmem:[%s4984_s0 + $0x68] sm:$0xff]  ;;  %v72_v27 = vpack.c.bf16 %v62_v24, %v61_v23  ;;  %v65_v29 = vld [vmem:[%s4984_s0 + $0x70] sm:$0xff]  ;;  %397 = vst [vmem:[#allocation2 + $0xa0] sm:$0xf] %v4469_v0 }
  0x1b   :  { %v73_v28 = vpack.c.bf16 %v64_v26, %v63_v25  ;;  %v66_v30 = vld [vmem:[%s4984_s0 + $0x78] sm:$0xff]  ;;  %v4260_v32 = vld [vmem:[#allocation3 + $0x40] sm:$0xff]   ;;  %v4264_v39 = vld [vmem:[#allocation3 + $0x50] sm:$0xff]   ;;  %398 = vst [vmem:[#allocation2 + $0xc8] sm:$0xf] %v4469_v0 }
  0x1c   :  { %v74_v31 = vpack.c.bf16 %v66_v30, %v65_v29  ;;  %v4261_v33 = vld [vmem:[#allocation3 + $0xc0] sm:$0xff]   ;;  %v4262_v34 = vld [vmem:[#allocation3 + $0x48] sm:$0xff]   ;;  %v4265_v42 = vld [vmem:[#allocation3 + $0xd0] sm:$0xff]   ;;  %400 = vst [vmem:[#allocation2 + $0x24] sm:$0xf] %v4469_v0 }
  0x1d   :  { %3770 = vmatpush3.bf16.msra.mxu0 %v4254_v2  ;;  %3893 = vmatprep.subr.bf16.mxu1 %v4261_v33  ;;  %v4263_v37 = vld [vmem:[#allocation3 + $0xc8] sm:$0xff]   ;;  %v4266_v44 = vld [vmem:[#allocation3 + $0x58] sm:$0xff]   ;;  %v4268_v51 = vld [vmem:[#allocation3 + $0x60] sm:$0xff]   ;;  %401 = vst [vmem:[#allocation2 + $0x4c] sm:$0xf] %v4469_v0 }
  0x1e   :  { %3771 = vmatprep.subr.bf16.mxu0 %v4255_v3  ;;  %3894 = vmatpush3.bf16.msra.mxu1 %v4261_v33  ;;  %v4267_v48 = vld [vmem:[#allocation3 + $0xd8] sm:$0xff]   ;;  %v4269_v54 = vld [vmem:[#allocation3 + $0xe0] sm:$0xff]   ;;  %v4270_v56 = vld [vmem:[#allocation3 + $0x68] sm:$0xff]   ;;  %402 = vst [vmem:[#allocation2 + $0x74] sm:$0xf] %v4469_v0 }
  0x1f   :  { %3895 = vmatprep.subr.bf16.mxu1 %v4263_v37  ;;  %v4271_v60 = vld [vmem:[#allocation3 + $0xe8] sm:$0xff]   ;;  %v4272_v63 = vld [vmem:[#allocation3 + $0x70] sm:$0xff]   ;;  %403 = vst [vmem:[#allocation2 + $0x9c] sm:$0xf] %v4469_v0  ;;  %404 = vst [vmem:[#allocation2 + $0xc4] sm:$0xf] %v4469_v0 }
  0x20   :  { %405 = vst [vmem:[#allocation2 + $0xec] sm:$0xf] %v4469_v0  ;;  %v4274_v4 = vld [vmem:[#allocation3 + $0x78] sm:$0xff]   ;;  %v4642_v14 = vld [vmem:[#allocation3] sm:$0xff]  }
  0x21   :  { %3772 = vmatpush3.bf16.msra.mxu0 %v4255_v3  ;;  %v4273_v3 = vld [vmem:[#allocation3 + $0xf0] sm:$0xff]   ;;  %v4275_v5 = vld [vmem:[#allocation3 + $0xf8] sm:$0xff]   ;;  %v4645_v17 = vld [vmem:[#allocation3 + $0x100] sm:$0xff]  }
  0x22   :  { %3773 = vmatprep.subr.bf16.mxu0 %v4256_v7  ;;  %3896 = vmatpush3.bf16.msra.mxu1 %v4263_v37 }
  0x23   :  { %3897 = vmatprep.subr.bf16.mxu1 %v4265_v42 }
  0x25   :  { %3774 = vmatpush3.bf16.msra.mxu0 %v4256_v7 }
  0x26   :  { %3775 = vmatprep.subr.bf16.mxu0 %v4257_v8  ;;  %3898 = vmatpush3.bf16.msra.mxu1 %v4265_v42 }
  0x27   :  { %3899 = vmatprep.subr.bf16.mxu1 %v4267_v48 }
  0x29   :  { %3776 = vmatpush3.bf16.msra.mxu0 %v4257_v8 }
  0x2a   :  { %3777 = vmatprep.subr.bf16.mxu0 %v4258_v9  ;;  %3900 = vmatpush3.bf16.msra.mxu1 %v4267_v48 }
  0x2b   :  { %3901 = vmatprep.subr.bf16.mxu1 %v4269_v54 }
  0x2d   :  { %3778 = vmatpush3.bf16.msra.mxu0 %v4258_v9 }
  0x2e   :  { %3779 = vmatprep.subr.bf16.mxu0 %v4259_v10  ;;  %3902 = vmatpush3.bf16.msra.mxu1 %v4269_v54 }
  0x2f   :  { %3903 = vmatprep.subr.bf16.mxu1 %v4271_v60 }
  0x31   :  { %3780 = vmatpush3.bf16.msra.mxu0 %v4259_v10 }
  0x32   :  { %3797 = vmatprep.subr.bf16.mxu0 %v4260_v32  ;;  %3904 = vmatpush3.bf16.msra.mxu1 %v4271_v60 }
  0x33   :  { %3905 = vmatprep.subr.bf16.mxu1 %v4273_v3 }
  0x34   :  { %3782 = vmatmul.mubr.bf16.vlgmr.msra.gmra.mrb[0].mxu0 %v68_v15 }
  0x35   :  { %3785 = vmatprep.mubr.bf16.mxu0 %v69_v16  ;;  %3798 = vmatpush3.bf16.msra.mxu0 %v4260_v32 }
  0x36   :  { %3799 = vmatprep.subr.bf16.mxu0 %v4262_v34  ;;  %3906 = vmatpush3.bf16.msra.mxu1 %v4273_v3 }
  0x37   :  { %3907 = vmatprep.subr.bf16.mxu1 %v4275_v5 }
  0x39   :  { %3800 = vmatpush3.bf16.msra.mxu0 %v4262_v34 }
  0x3a   :  { %3801 = vmatprep.subr.bf16.mxu0 %v4264_v39  ;;  %3908 = vmatpush3.bf16.msra.mxu1 %v4275_v5 }
  0x3b   :  { %3925 = vmatprep.subr.bf16.mxu1 %v4645_v17 }
  0x3c   :  { %3786 = vmatmul.mubr.bf16.gmra.mrb[4].mxu0 %v70_v21 }
  0x3d   :  { %3789 = vmatprep.mubr.bf16.mxu0 %v71_v22  ;;  %3802 = vmatpush3.bf16.msra.mxu0 %v4264_v39 }
  0x3e   :  { %3803 = vmatprep.subr.bf16.mxu0 %v4266_v44 }
  0x41   :  { %3804 = vmatpush3.bf16.msra.mxu0 %v4266_v44 }
  0x42   :  { %3805 = vmatprep.subr.bf16.mxu0 %v4268_v51 }
  0x44   :  { %3790 = vmatmul.mubr.bf16.gmra.mrb[8].mxu0 %v72_v27 }
  0x45   :  { %3793 = vmatprep.mubr.bf16.mxu0 %v73_v28  ;;  %3806 = vmatpush3.bf16.msra.mxu0 %v4268_v51 }
  0x46   :  { %3807 = vmatprep.subr.bf16.mxu0 %v4270_v56 }
  0x49   :  { %3808 = vmatpush3.bf16.msra.mxu0 %v4270_v56 }
  0x4a   :  { %3809 = vmatprep.subr.bf16.mxu0 %v4272_v63 }
  0x4c   :  { %3794 = vmatmul.mubr.bf16.gmra.mrb[12].mxu0 %v74_v31 }
  0x4d   :  { %3810 = vmatpush3.bf16.msra.mxu0 %v4272_v63 }
  0x4e   :  { %3811 = vmatprep.subr.bf16.mxu0 %v4274_v4 }
  0x51   :  { %3812 = vmatpush3.bf16.msra.mxu0 %v4274_v4 }
  0x52   :  { %3829 = vmatprep.subr.bf16.mxu0 %v4642_v14 }
 0x107   :  { %v4612_v35 = vpop.f32.mrb[0].mxu0 }
 0x108   :  { %v4614_v36 = vpop.f32.mrb[1].mxu0 }
 0x109   :  { %v4616_v38 = vpop.f32.mrb[2].mxu0 }
 0x10a   :  { %v4618_v40 = vpop.f32.mrb[3].mxu0 }
 0x10b   :  { %v238_v41 = vadd.f32 %v4618_v40, %v4614_v36 }
 0x10d   :  { %v239_v43 = vadd.f32 %v4612_v35, %v238_v41 }
 0x10f   :  { %v4623_v45 = vpop.f32.mrb[4].mxu0  ;;  %v240_v46 = vadd.f32 %v4616_v38, %v239_v43 }
 0x110   :  { %v4626_v47 = vpop.f32.mrb[5].mxu0 }
 0x111   :  { %v241_v49 = vadd.f32 %v240_v46, %v4626_v47  ;;  %v4629_v50 = vpop.f32.mrb[6].mxu0 }
 0x112   :  { %v4631_v52 = vpop.f32.mrb[7].mxu0 }
 0x113   :  { %v242_v53 = vadd.f32 %v241_v49, %v4631_v52 }
 0x115   :  { %v243_v55 = vadd.f32 %v4623_v45, %v242_v53 }
 0x117   :  { %v4635_v57 = vpop.f32.mrb[8].mxu0  ;;  %v244_v58 = vadd.f32 %v4629_v50, %v243_v55 }
 0x118   :  { %v4638_v59 = vpop.f32.mrb[9].mxu0 }
 0x119   :  { %v245_v61 = vadd.f32 %v244_v58, %v4638_v59  ;;  %v3792_v62 = vpop.f32.mrb[10].mxu0 }
 0x11a   :  { %v208_v1 = vpop.f32.mrb[11].mxu0 }
 0x11b   :  { %v246_v2 = vadd.f32 %v245_v61, %v208_v1 }
 0x11d   :  { %v247_v6 = vadd.f32 %v4635_v57, %v246_v2 }
 0x11f   :  { %v3795_v7 = vpop.f32.mrb[12].mxu0  ;;  %v248_v8 = vadd.f32 %v3792_v62, %v247_v6 }
 0x120   :  { %v221_v9 = vpop.f32.mrb[13].mxu0 }
 0x121   :  { %v249_v10 = vadd.f32 %v248_v8, %v221_v9  ;;  %v3796_v11 = vpop.f32.mrb[14].mxu0 }
 0x122   :  { %v224_v12 = vpop.f32.mrb[15].mxu0 }
 0x123   :  { %v250_v13 = vadd.f32 %v249_v10, %v224_v12 }
 0x125   :  { %v251_v15 = vadd.f32 %v3795_v7, %v250_v13 }
 0x127   :  { %v252_v16 = vadd.f32 %v3796_v11, %v251_v15 }
 0x129   :  { %v253_v18 = vrot.slane %v252_v16, 4 }
 0x12b   :  { %v254_v19 = vadd.f32 %v253_v18, %v252_v16 }
 0x12d   :  { %v255_v20 = vrot.slane %v254_v19, 2 }
 0x12f   :  { %v256_v21 = vadd.f32 %v255_v20, %v254_v19 }
 0x131   :  { %v257_v22 = vrot.slane %v256_v21, 1 }
 0x133   :  { %v258_v23 = vadd.f32 %v257_v22, %v256_v21 }
 0x135   :  { %v260_v24 = vmul.f32 0.0078125, %v258_v23  ;;  %v3323_v23 = vld [vmem:[%s4988_s4] ss:$0 sm:$0xff] }
 0x137   :  { %v261_v25 = vsub.f32 %v4614_v36, %v260_v24  ;;  %v262_v26 = vsub.f32 %v4618_v40, %v260_v24  ;;  %v263_v27 = vsub.f32 %v4612_v35, %v260_v24  ;;  %v264_v28 = vsub.f32 %v4616_v38, %v260_v24 }
 0x138   :  { %v265_v29 = vsub.f32 %v4626_v47, %v260_v24  ;;  %v266_v30 = vsub.f32 %v4631_v52, %v260_v24  ;;  %v267_v31 = vsub.f32 %v4623_v45, %v260_v24  ;;  %v268_v32 = vsub.f32 %v4629_v50, %v260_v24 }
 0x139   :  { %v269_v33 = vsub.f32 %v4638_v59, %v260_v24  ;;  %v270_v34 = vsub.f32 %v208_v1, %v260_v24  ;;  %v271_v37 = vsub.f32 %v4635_v57, %v260_v24  ;;  %v272_v36 = vsub.f32 %v3792_v62, %v260_v24 }
 0x13a   :  { %v273_v39 = vsub.f32 %v221_v9, %v260_v24  ;;  %v274_v40 = vsub.f32 %v224_v12, %v260_v24  ;;  %v275_v41 = vsub.f32 %v3795_v7, %v260_v24  ;;  %v276_v35 = vsub.f32 %v3796_v11, %v260_v24 }
 0x13b   :  { %v277_v42 = vmul.f32 %v261_v25, %v261_v25  ;;  %v278_v38 = vmul.f32 %v262_v26, %v262_v26  ;;  %v279_v43 = vmul.f32 %v263_v27, %v263_v27  ;;  %v280_v46 = vmul.f32 %v264_v28, %v264_v28 }
 0x13c   :  { %v281_v48 = vmul.f32 %v265_v29, %v265_v29  ;;  %v282_v49 = vmul.f32 %v266_v30, %v266_v30  ;;  %v283_v51 = vmul.f32 %v267_v31, %v267_v31  ;;  %v284_v53 = vmul.f32 %v268_v32, %v268_v32 }
 0x13d   :  { %v293_v44 = vadd.f32 %v278_v38, %v277_v42  ;;  %v285_v55 = vmul.f32 %v269_v33, %v269_v33  ;;  %v286_v57 = vmul.f32 %v270_v34, %v270_v34  ;;  %v287_v59 = vmul.f32 %v271_v37, %v271_v37 }
 0x13e   :  { %v288_v61 = vmul.f32 %v272_v36, %v272_v36  ;;  %v289_v63 = vmul.f32 %v273_v39, %v273_v39  ;;  %v290_v1 = vmul.f32 %v274_v40, %v274_v40  ;;  %v291_v3 = vmul.f32 %v275_v41, %v275_v41 }
 0x13f   :  { %v294_v47 = vadd.f32 %v293_v44, %v279_v43  ;;  %v292_v5 = vmul.f32 %v276_v35, %v276_v35 }
 0x141   :  { %v295_v45 = vadd.f32 %v294_v47, %v280_v46 }
 0x143   :  { %v296_v50 = vadd.f32 %v295_v45, %v281_v48 }
 0x145   :  { %v297_v52 = vadd.f32 %v296_v50, %v282_v49 }
 0x147   :  { %v298_v54 = vadd.f32 %v297_v52, %v283_v51 }
 0x149   :  { %v299_v56 = vadd.f32 %v298_v54, %v284_v53 }
 0x14b   :  { %v300_v58 = vadd.f32 %v299_v56, %v285_v55 }
 0x14d   :  { %v301_v60 = vadd.f32 %v300_v58, %v286_v57 }
 0x14f   :  { %v302_v62 = vadd.f32 %v301_v60, %v287_v59 }
 0x151   :  { %v303_v0 = vadd.f32 %v302_v62, %v288_v61 }
 0x153   :  { %v304_v2 = vadd.f32 %v303_v0, %v289_v63 }
 0x155   :  { %v305_v4 = vadd.f32 %v304_v2, %v290_v1 }
 0x157   :  { %v306_v6 = vadd.f32 %v305_v4, %v291_v3 }
 0x159   :  { %v307_v7 = vadd.f32 %v306_v6, %v292_v5 }
 0x15b   :  { %v308_v8 = vrot.slane %v307_v7, 4 }
 0x15d   :  { %v309_v9 = vadd.f32 %v308_v8, %v307_v7 }
 0x15f   :  { %v310_v10 = vrot.slane %v309_v9, 2 }
 0x161   :  { %v311_v11 = vadd.f32 %v310_v10, %v309_v9 }
 0x163   :  { %v312_v12 = vrot.slane %v311_v11, 1 }
 0x165   :  { %v313_v13 = vadd.f32 %v312_v12, %v311_v11 }
 0x167   :  { %v314_v15 = vmul.f32 0.0078125, %v313_v13 }
 0x169   :  { %v315_v16 = vadd.f32 1e-05, %v314_v15 }
 0x16b   :  { %4412 = vrsqrt.f32 %v315_v16 }
 0x175   :  { %v4413_v18 = vpop.eup %4412 }
 0x176   :  { %v317_v19 = vmul.f32 %v4413_v18, %v261_v25  ;;  %v318_v20 = vmul.f32 %v4413_v18, %v262_v26  ;;  %v319_v21 = vmul.f32 %v4413_v18, %v263_v27  ;;  %v320_v22 = vmul.f32 %v4413_v18, %v264_v28  ;;  %v3324_v28 = vld [vmem:[%s4989_s5] ss:$0 sm:$0xff] }
 0x177   :  { %v321_v24 = vmul.f32 %v4413_v18, %v265_v29  ;;  %v322_v42 = vmul.f32 %v4413_v18, %v266_v30  ;;  %v323_v38 = vmul.f32 %v4413_v18, %v267_v31  ;;  %v324_v43 = vmul.f32 %v4413_v18, %v268_v32 }
 0x178   :  { %v325_v44 = vmul.f32 %v4413_v18, %v269_v33  ;;  %v326_v46 = vmul.f32 %v4413_v18, %v270_v34  ;;  %v327_v47 = vmul.f32 %v4413_v18, %v271_v37  ;;  %v328_v48 = vmul.f32 %v4413_v18, %v272_v36 }
 0x179   :  { %v329_v45 = vmul.f32 %v4413_v18, %v273_v39  ;;  %v330_v49 = vmul.f32 %v4413_v18, %v274_v40  ;;  %v331_v50 = vmul.f32 %v4413_v18, %v275_v41  ;;  %v332_v51 = vmul.f32 %v4413_v18, %v276_v35 }
 0x17a   :  { %v339_v25 = vmul.f32 %v3323_v23, %v317_v19  ;;  %v340_v26 = vmul.f32 %v3323_v23, %v318_v20  ;;  %v342_v27 = vmul.f32 %v3323_v23, %v320_v22  ;;  %v343_v52 = vmul.f32 %v3323_v23, %v321_v24 }
 0x17b   :  { %v344_v29 = vmul.f32 %v3323_v23, %v322_v42  ;;  %v345_v30 = vmul.f32 %v3323_v23, %v323_v38  ;;  %v346_v31 = vmul.f32 %v3323_v23, %v324_v43  ;;  %v347_v32 = vmul.f32 %v3323_v23, %v325_v44 }
 0x17c   :  { %v348_v33 = vmul.f32 %v3323_v23, %v326_v46  ;;  %v349_v34 = vmul.f32 %v3323_v23, %v327_v47  ;;  %v350_v37 = vmul.f32 %v3323_v23, %v328_v48  ;;  %v351_v36 = vmul.f32 %v3323_v23, %v329_v45 }
 0x17d   :  { %v352_v39 = vmul.f32 %v3323_v23, %v330_v49  ;;  %v353_v40 = vmul.f32 %v3323_v23, %v331_v50  ;;  %v354_v41 = vmul.f32 %v3323_v23, %v332_v51  ;;  %v341_v35 = vmul.f32 %v3323_v23, %v319_v21 }
 0x17e   :  { %v361_v53 = vadd.f32 %v3324_v28, %v339_v25  ;;  %v362_v54 = vadd.f32 %v3324_v28, %v340_v26  ;;  %v364_v55 = vadd.f32 %v3324_v28, %v342_v27  ;;  %v365_v56 = vadd.f32 %v3324_v28, %v343_v52 }
 0x17f   :  { %v366_v57 = vadd.f32 %v3324_v28, %v344_v29  ;;  %v367_v58 = vadd.f32 %v3324_v28, %v345_v30  ;;  %v368_v59 = vadd.f32 %v3324_v28, %v346_v31  ;;  %v369_v60 = vadd.f32 %v3324_v28, %v347_v32 }
 0x180   :  { %v370_v61 = vadd.f32 %v3324_v28, %v348_v33  ;;  %v371_v62 = vadd.f32 %v3324_v28, %v349_v34  ;;  %v372_v63 = vadd.f32 %v3324_v28, %v350_v37  ;;  %v373_v0 = vadd.f32 %v3324_v28, %v351_v36 }
 0x181   :  { %v374_v1 = vadd.f32 %v3324_v28, %v352_v39  ;;  %v375_v2 = vadd.f32 %v3324_v28, %v353_v40  ;;  %v376_v3 = vadd.f32 %v3324_v28, %v354_v41  ;;  %v363_v4 = vadd.f32 %v3324_v28, %v341_v35 }
 0x182   :  { %v4664_v5 = vmax.f32 %v361_v53, 0.0  ;;  %v4666_v6 = vmax.f32 %v362_v54, 0.0  ;;  %v4668_v7 = vmax.f32 %v364_v55, 0.0  ;;  %v4670_v8 = vmax.f32 %v365_v56, 0.0 }
 0x183   :  { %v4672_v9 = vmax.f32 %v366_v57, 0.0  ;;  %v4674_v10 = vmax.f32 %v367_v58, 0.0  ;;  %v4676_v11 = vmax.f32 %v368_v59, 0.0  ;;  %v4678_v12 = vmax.f32 %v369_v60, 0.0 }
 0x184   :  { %v4680_v13 = vmax.f32 %v370_v61, 0.0  ;;  %v4682_v15 = vmax.f32 %v371_v62, 0.0  ;;  %v4684_v16 = vmax.f32 %v372_v63, 0.0  ;;  %v4686_v18 = vmax.f32 %v373_v0, 0.0 }
 0x185   :  { %v4688_v19 = vmax.f32 %v374_v1, 0.0  ;;  %v4690_v20 = vmax.f32 %v375_v2, 0.0  ;;  %v4692_v21 = vmax.f32 %v376_v3, 0.0  ;;  %v4694_v22 = vmax.f32 %v363_v4, 0.0 }
 0x186   :  { %v425_v23 = vrot.slane %v4668_v7, 7  ;;  %v427_v24 = vrot.slane %v4672_v9, 7  ;;  %v428_v42 = vrot.slane %v4674_v10, 7  ;;  %v429_v38 = vrot.slane %v4676_v11, 7 }
 0x187   :  { %v430_v43 = vrot.slane %v4678_v12, 7  ;;  %v431_v44 = vrot.slane %v4680_v13, 7  ;;  %v432_v46 = vrot.slane %v4682_v15, 7  ;;  %v433_v47 = vrot.slane %v4684_v16, 7 }
 0x188   :  { %v434_v48 = vrot.slane %v4686_v18, 7  ;;  %v435_v45 = vrot.slane %v4688_v19, 7  ;;  %v436_v49 = vrot.slane %v4690_v20, 7  ;;  %v426_v50 = vrot.slane %v4670_v8, 7 }
 0x189   :  { %v437_v51 = vrot.slane %v4692_v21, 7  ;;  %v460_v25 = vsel %vm454_vm0, 0.0, %v427_v24  ;;  %v461_v26 = vsel %vm454_vm0, 0.0, %v428_v42  ;;  %v462_v27 = vsel %vm454_vm0, 0.0, %v429_v38 }
 0x18a   :  { %v463_v28 = vsel %vm454_vm0, 0.0, %v430_v43  ;;  %v464_v52 = vsel %vm454_vm0, 0.0, %v431_v44  ;;  %v465_v29 = vsel %vm454_vm0, 0.0, %v432_v46  ;;  %v466_v30 = vsel %vm454_vm0, 0.0, %v433_v47 }
 0x18b   :  { %v467_v31 = vsel %vm454_vm0, 0.0, %v434_v48  ;;  %v468_v32 = vsel %vm454_vm0, 0.0, %v435_v45  ;;  %v469_v33 = vsel %vm454_vm0, 0.0, %v436_v49  ;;  %v470_v34 = vsel %vm454_vm0, 0.0, %v437_v51 }
 0x18c   :  { %v474_v37 = vrot.slane %v4668_v7, 1  ;;  %v476_v36 = vrot.slane %v4672_v9, 1  ;;  %v477_v39 = vrot.slane %v4674_v10, 1  ;;  %v478_v40 = vrot.slane %v4676_v11, 1 }
 0x18d   :  { %v479_v41 = vrot.slane %v4678_v12, 1  ;;  %v480_v35 = vrot.slane %v4680_v13, 1  ;;  %v481_v53 = vrot.slane %v4682_v15, 1  ;;  %v482_v54 = vrot.slane %v4684_v16, 1 }
 0x18e   :  { %v483_v55 = vrot.slane %v4686_v18, 1  ;;  %v484_v56 = vrot.slane %v4688_v19, 1  ;;  %v485_v57 = vrot.slane %v4690_v20, 1  ;;  %v486_v58 = vrot.slane %v4692_v21, 1 }
 0x18f   :  { %v509_v59 = vsel %vm503_vm1, %v476_v36, 0.0  ;;  %v510_v60 = vsel %vm503_vm1, %v477_v39, 0.0  ;;  %v511_v61 = vsel %vm503_vm1, %v478_v40, 0.0  ;;  %v512_v62 = vsel %vm503_vm1, %v479_v41, 0.0 }
 0x190   :  { %v513_v63 = vsel %vm503_vm1, %v480_v35, 0.0  ;;  %v514_v0 = vsel %vm503_vm1, %v481_v53, 0.0  ;;  %v515_v1 = vsel %vm503_vm1, %v482_v54, 0.0  ;;  %v516_v2 = vsel %vm503_vm1, %v483_v55, 0.0 }
 0x191   :  { %v517_v3 = vsel %vm503_vm1, %v484_v56, 0.0  ;;  %v518_v4 = vsel %vm503_vm1, %v485_v57, 0.0  ;;  %v519_v24 = vsel %vm503_vm1, %v486_v58, 0.0  ;;  %v527_v42 = vpack.c.bf16 %v462_v27, %v462_v27  ;;  %v4283_v58 = vld [vmem:[#allocation3 + $0x8] sm:$0xff]  }
 0x192   :  { %v528_v38 = vpack.c.bf16 %v463_v28, %v463_v28  ;;  %v535_v43 = vpack.c.bf16 %v470_v34, %v470_v34  ;;  %v3494_v44 = vpack.c.bf16 %v461_v26, %v460_v25  ;;  %v3499_v46 = vpack.c.bf16 %v465_v29, %v464_v52 }
 0x193   :  { %v3504_v47 = vpack.c.bf16 %v467_v31, %v466_v30  ;;  %v3509_v48 = vpack.c.bf16 %v469_v33, %v468_v32  ;;  %v560_v45 = vpack.c.bf16 %v4676_v11, %v4676_v11  ;;  %v561_v49 = vpack.c.bf16 %v4678_v12, %v4678_v12  ;;  %544 = vst [vmem:[#allocation2 + $0x20] sm:$0xf] %v527_v42 }
 0x194   :  { %545 = vst [vmem:[#allocation2 + $0x2c] sm:$0xf] %v528_v38  ;;  %552 = vst [vmem:[#allocation2 + $0x48] sm:$0xf] %v535_v43  ;;  %v568_v51 = vpack.c.bf16 %v4692_v21, %v4692_v21  ;;  %v3514_v27 = vpack.c.bf16 %v4694_v22, %v4666_v6  ;;  %v3519_v25 = vpack.c.bf16 %v4670_v8, %v4668_v7  ;;  %v459_v31 = vsel %vm454_vm0, 0.0, %v426_v50  ;;  %v4299_v38 = vld [vmem:[#allocation3 + $0x28] sm:$0xff]  }
 0x195   :  { %3573 = vst [vmem:[#allocation2 + $0x18] sm:$0xff] %v3494_v44   ;;  %3574 = vst [vmem:[#allocation2 + $0x30] sm:$0xff] %v3499_v46   ;;  %v3524_v11 = vpack.c.bf16 %v4674_v10, %v4672_v9  ;;  %v3529_v12 = vpack.c.bf16 %v4682_v15, %v4680_v13  ;;  %v3534_v21 = vpack.c.bf16 %v4686_v18, %v4684_v16  ;;  %v422_v16 = vrot.slane %v4664_v5, 7  ;;  %v4301_v46 = vld [vmem:[#allocation3 + $0x128] sm:$0xff]  }
 0x196   :  { %3575 = vst [vmem:[#allocation2 + $0x38] sm:$0xff] %v3504_v47   ;;  %3576 = vst [vmem:[#allocation2 + $0x40] sm:$0xff] %v3509_v48   ;;  %v3539_v26 = vpack.c.bf16 %v4690_v20, %v4688_v19  ;;  %v593_v28 = vpack.c.bf16 %v511_v61, %v511_v61  ;;  %v594_v52 = vpack.c.bf16 %v512_v62, %v512_v62  ;;  %v423_v18 = vrot.slane %v4666_v6, 7  ;;  %v4285_v61 = vld [vmem:[#allocation3 + $0x108] sm:$0xff]   ;;  %v4303_v47 = vld [vmem:[#allocation3 + $0x30] sm:$0xff]  }
 0x197   :  { %577 = vst [vmem:[#allocation2 + $0x70] sm:$0xf] %v560_v45  ;;  %3577 = vst [vmem:[#allocation2 + $0x58] sm:$0xff] %v3514_v27   ;;  %v601_v29 = vpack.c.bf16 %v519_v24, %v519_v24  ;;  %v3554_v30 = vpack.c.bf16 %v510_v60, %v509_v59  ;;  %v3559_v9 = vpack.c.bf16 %v514_v0, %v513_v63  ;;  %v424_v19 = vrot.slane %v4694_v22, 7  ;;  %v4287_v63 = vld [vmem:[#allocation3 + $0x10] sm:$0xff]  }
 0x198   :  { %578 = vst [vmem:[#allocation2 + $0x7c] sm:$0xf] %v561_v49  ;;  %585 = vst [vmem:[#allocation2 + $0x98] sm:$0xf] %v568_v51  ;;  %v3564_v10 = vpack.c.bf16 %v516_v2, %v515_v1  ;;  %v3569_v13 = vpack.c.bf16 %v518_v4, %v517_v3  ;;  %v553_v15 = vpack.c.bf16 %v4664_v5, %v4664_v5  ;;  %v458_v20 = vsel %vm454_vm0, 0.0, %v425_v23  ;;  %v4291_v2 = vld [vmem:[#allocation3 + $0x18] sm:$0xff]  }
 0x199   :  { %3578 = vst [vmem:[#allocation2 + $0x60] sm:$0xff] %v3519_v25   ;;  %3579 = vst [vmem:[#allocation2 + $0x68] sm:$0xff] %v3524_v11   ;;  %v471_v32 = vrot.slane %v4664_v5, 1  ;;  %v472_v33 = vrot.slane %v4666_v6, 1  ;;  %v473_v34 = vrot.slane %v4694_v22, 1  ;;  %v455_v36 = vsel %vm454_vm0, 0.0, %v422_v16 }
 0x19a   :  { %3580 = vst [vmem:[#allocation2 + $0x80] sm:$0xff] %v3529_v12   ;;  %3581 = vst [vmem:[#allocation2 + $0x88] sm:$0xff] %v3534_v21   ;;  %v456_v39 = vsel %vm454_vm0, 0.0, %v423_v18  ;;  %v457_v23 = vsel %vm454_vm0, 0.0, %v424_v19  ;;  %v3489_v40 = vpack.c.bf16 %v459_v31, %v458_v20  ;;  %v520_v41 = vpack.c.bf16 %v455_v36, %v455_v36  ;;  %v4293_v4 = vld [vmem:[#allocation3 + $0x118] sm:$0xff]   ;;  %v4305_v49 = vld [vmem:[#allocation3 + $0x130] sm:$0xff]  }
 0x19b   :  { %3582 = vst [vmem:[#allocation2 + $0x90] sm:$0xff] %v3539_v26   ;;  %611 = vst [vmem:[#allocation2 + $0xcc] sm:$0xf] %v594_v52  ;;  %v3484_v35 = vpack.c.bf16 %v457_v23, %v456_v39  ;;  %v475_v53 = vrot.slane %v4670_v8, 1  ;;  %v504_v50 = vsel %vm503_vm1, %v471_v32, 0.0  ;;  %v505_v6 = vsel %vm503_vm1, %v472_v33, 0.0 }
 0x19c   :  { %618 = vst [vmem:[#allocation2 + $0xe8] sm:$0xf] %v601_v29  ;;  %3585 = vst [vmem:[#allocation2 + $0xb8] sm:$0xff] %v3554_v30   ;;  %v586_v5 = vpack.c.bf16 %v504_v50, %v504_v50  ;;  %v506_v22 = vsel %vm503_vm1, %v473_v34, 0.0  ;;  %v507_v56 = vsel %vm503_vm1, %v474_v37, 0.0  ;;  %v4289_v37 = vld [vmem:[#allocation3 + $0x110] sm:$0xff]  }
 0x19d   :  { %610 = vst [vmem:[#allocation2 + $0xc0] sm:$0xf] %v593_v28  ;;  %3586 = vst [vmem:[#allocation2 + $0xd0] sm:$0xff] %v3559_v9   ;;  %v3544_v55 = vpack.c.bf16 %v506_v22, %v505_v6  ;;  %v508_v8 = vsel %vm503_vm1, %v475_v53, 0.0  ;;  %v4290_v24 = vld [vmem:[#allocation2 + $0x1c] sm:$0xff]   ;;  %v4292_v42 = vld [vmem:[#allocation2 + $0x2c] sm:$0xff]  }
 0x19e   :  { %3587 = vst [vmem:[#allocation2 + $0xd8] sm:$0xff] %v3564_v10   ;;  %3588 = vst [vmem:[#allocation2 + $0xe0] sm:$0xff] %v3569_v13   ;;  %v4277_v54 = vld [vmem:[#allocation2 + $0x58] sm:$0xff]   ;;  %v3549_v59 = vpack.c.bf16 %v508_v8, %v507_v56  ;;  %v4307_v51 = vld [vmem:[#allocation3 + $0x38] sm:$0xff]  }
 0x19f   :  { %570 = vst [vmem:[#allocation2 + $0x54] sm:$0xf] %v553_v15  ;;  %3572 = vst [vmem:[#allocation2 + $0x10] sm:$0xff] %v3489_v40   ;;  %v4288_v3 = vld [vmem:[#allocation2 + $0x78] sm:$0xff]   ;;  %v4309_v11 = vld [vmem:[#allocation3 + $0x138] sm:$0xff]  }
 0x1a0   :  { %537 = vst [vmem:[#allocation2 + $0x4] sm:$0xf] %v520_v41  ;;  %3571 = vst [vmem:[#allocation2 + $0x8] sm:$0xff] %v3484_v35   ;;  %v4279_v60 = vld [vmem:[#allocation2 + $0x60] sm:$0xff]   ;;  %v4286_v1 = vld [vmem:[#allocation2 + $0x68] sm:$0xff]  }
 0x1a1   :  { %603 = vst [vmem:[#allocation2 + $0xa4] sm:$0xf] %v586_v5  ;;  %3583 = vst [vmem:[#allocation2 + $0xa8] sm:$0xff] %v3544_v55   ;;  %v4294_v43 = vld [vmem:[#allocation2 + $0x80] sm:$0xff]   ;;  %v4296_v44 = vld [vmem:[#allocation2 + $0x88] sm:$0xff]  }
 0x1a2   :  { %3584 = vst [vmem:[#allocation2 + $0xb0] sm:$0xff] %v3549_v59   ;;  %v4298_v48 = vld [vmem:[#allocation2 + $0x34] sm:$0xff]   ;;  %v4300_v45 = vld [vmem:[#allocation2 + $0x3c] sm:$0xff]   ;;  %v4306_v21 = vld [vmem:[#allocation2 + $0x44] sm:$0xff]  }
 0x1a3   :  { %v4302_v27 = vld [vmem:[#allocation2 + $0x90] sm:$0xff]   ;;  %v4315_v52 = vld [vmem:[#allocation3 + $0x88] sm:$0xff]   ;;  %v4319_v10 = vld [vmem:[#allocation3 + $0x90] sm:$0xff]  }
 0x1a4   :  { %v4311_v12 = vld [vmem:[#allocation3 + $0x80] sm:$0xff]   ;;  %v4317_v9 = vld [vmem:[#allocation3 + $0x148] sm:$0xff]   ;;  %v4316_v15 = vld [vmem:[#allocation2 + $0x64] sm:$0xff]  }
 0x1a5   :  { %v4313_v28 = vld [vmem:[#allocation3 + $0x140] sm:$0xff]   ;;  %v4314_v13 = vld [vmem:[#allocation2 + $0x5c] sm:$0xff]   ;;  %v4323_v18 = vld [vmem:[#allocation3 + $0x98] sm:$0xff]  }
 0x1a6   :  { %v4276_v57 = vld [vmem:[#allocation2 + $0x50] sm:$0xff]   ;;  %v4321_v16 = vld [vmem:[#allocation3 + $0x150] sm:$0xff]   ;;  %v4318_v19 = vld [vmem:[#allocation2 + $0x18] sm:$0xff]  }
 0x1a7   :  { %3813 = vmatprep.mubr.bf16.mxu0 %v4276_v57  ;;  %v4280_v62 = vld [vmem:[#allocation2 + $0x4] sm:$0xff]   ;;  %v4282_v0 = vld [vmem:[#allocation2 + $0xc] sm:$0xff]   ;;  %v4284_v7 = vld [vmem:[#allocation2 + $0x14] sm:$0xff]  }
 0x1a8   :  { %3814 = vmatmul.mubr.bf16.vlgmr.msra.gmra.mrb[16].mxu0 %v4277_v54  ;;  %3909 = vmatprep.mubr.bf16.mxu1 %v4280_v62  ;;  %v4304_v25 = vld [vmem:[#allocation2] sm:$0xff]   ;;  %v4308_v26 = vld [vmem:[#allocation2 + $0x54] sm:$0xff]   ;;  %v4310_v29 = vld [vmem:[#allocation2 + $0x8] sm:$0xff]  }
 0x1a9   :  { %3817 = vmatprep.mubr.bf16.mxu0 %v4279_v60  ;;  %3830 = vmatpush3.bf16.msra.mxu0 %v4642_v14  ;;  %v4295_v14 = vld [vmem:[#allocation3 + $0x20] sm:$0xff]   ;;  %v4320_v20 = vld [vmem:[#allocation2 + $0x28] sm:$0xff]   ;;  %v4324_v34 = vld [vmem:[#allocation2 + $0x7c] sm:$0xff]  }
 0x1aa   :  { %3831 = vmatprep.subr.bf16.mxu0 %v4283_v58  ;;  %3910 = vmatmul.mubr.bf16.vlgmr.msra.gmra.mrb[0].mxu1 %v4282_v0  ;;  %v4312_v30 = vld [vmem:[#allocation2 + $0x10] sm:$0xff]   ;;  %v4325_v31 = vld [vmem:[#allocation3 + $0x158] sm:$0xff]   ;;  %v4331_v39 = vld [vmem:[#allocation3 + $0xa8] sm:$0xff]  }
 0x1ab   :  { %3926 = vmatpush3.bf16.msra.mxu1 %v4645_v17  ;;  %3913 = vmatprep.mubr.bf16.mxu1 %v4284_v7  ;;  %v4297_v17 = vld [vmem:[#allocation3 + $0x120] sm:$0xff]   ;;  %v4328_v40 = vld [vmem:[#allocation2 + $0x38] sm:$0xff]   ;;  %v4330_v35 = vld [vmem:[#allocation2 + $0x84] sm:$0xff]  }
 0x1ac   :  { %3927 = vmatprep.subr.bf16.mxu1 %v4285_v61  ;;  %v4327_v32 = vld [vmem:[#allocation3 + $0xa0] sm:$0xff]   ;;  %v4333_v41 = vld [vmem:[#allocation3 + $0x168] sm:$0xff]   ;;  %v4335_v50 = vld [vmem:[#allocation3 + $0xb0] sm:$0xff]  }
 0x1ad   :  { %3832 = vmatpush3.bf16.msra.mxu0 %v4283_v58  ;;  %v4322_v33 = vld [vmem:[#allocation2 + $0x6c] sm:$0xff]   ;;  %v4337_v5 = vld [vmem:[#allocation3 + $0x170] sm:$0xff]   ;;  %v4338_v56 = vld [vmem:[#allocation2 + $0x94] sm:$0xff]  }
 0x1ae   :  { %3833 = vmatprep.subr.bf16.mxu0 %v4287_v63  ;;  %v4329_v36 = vld [vmem:[#allocation3 + $0x160] sm:$0xff]   ;;  %v4339_v6 = vld [vmem:[#allocation3 + $0xb8] sm:$0xff]   ;;  %v4334_v22 = vld [vmem:[#allocation2 + $0x40] sm:$0xff]  }
 0x1af   :  { %3928 = vmatpush3.bf16.msra.mxu1 %v4285_v61  ;;  %v4326_v23 = vld [vmem:[#allocation2 + $0x30] sm:$0xff]   ;;  %v4336_v54 = vld [vmem:[#allocation2 + $0xa0] sm:$0xff]   ;;  %v4341_v55 = vld [vmem:[#allocation3 + $0x178] sm:$0xff]  }
 0x1b0   :  { %3818 = vmatmul.mubr.bf16.gmra.mrb[20].mxu0 %v4286_v1  ;;  %3929 = vmatprep.subr.bf16.mxu1 %v4289_v37  ;;  %v4332_v53 = vld [vmem:[#allocation2 + $0x8c] sm:$0xff]   ;;  %v4340_v57 = vld [vmem:[#allocation2 + $0xa4] sm:$0xff]   ;;  %v4347_v61 = vld [vmem:[#allocation3 + $0x188] sm:$0xff]  }
 0x1b1   :  { %3821 = vmatprep.mubr.bf16.mxu0 %v4288_v3  ;;  %3834 = vmatpush3.bf16.msra.mxu0 %v4287_v63  ;;  %v4344_v8 = vld [vmem:[#allocation3 + $0x180] sm:$0xff]   ;;  %v4342_v58 = vld [vmem:[#allocation2 + $0xa8] sm:$0xff]   ;;  %v4350_v63 = vld [vmem:[#allocation3 + $0x190] sm:$0xff]  }
 0x1b2   :  { %3835 = vmatprep.subr.bf16.mxu0 %v4291_v2  ;;  %3914 = vmatmul.mubr.bf16.gmra.mrb[4].mxu1 %v4290_v24  ;;  %v4343_v59 = vld [vmem:[#allocation2 + $0xb0] sm:$0xff]   ;;  %v4348_v0 = vld [vmem:[#allocation2 + $0xb8] sm:$0xff]   ;;  %v4349_v7 = vld [vmem:[#allocation2 + $0xc8] sm:$0xff]  }
 0x1b3   :  { %3930 = vmatpush3.bf16.msra.mxu1 %v4289_v37  ;;  %3917 = vmatprep.mubr.bf16.mxu1 %v4292_v42  ;;  %v4345_v60 = vld [vmem:[#allocation2 + $0xac] sm:$0xff]   ;;  %v4346_v62 = vld [vmem:[#allocation2 + $0xb4] sm:$0xff]   ;;  %v4351_v37 = vld [vmem:[#allocation2 + $0xbc] sm:$0xff]  }
 0x1b4   :  { %3931 = vmatprep.subr.bf16.mxu1 %v4293_v4  ;;  %v4353_v1 = vld [vmem:[#allocation3 + $0x198] sm:$0xff]   ;;  %v4356_v3 = vld [vmem:[#allocation3 + $0x1a0] sm:$0xff]   ;;  %v4359_v42 = vld [vmem:[#allocation3 + $0x1a8] sm:$0xff]  }
 0x1b5   :  { %3836 = vmatpush3.bf16.msra.mxu0 %v4291_v2  ;;  %v4352_v2 = vld [vmem:[#allocation2 + $0xcc] sm:$0xff]   ;;  %v4357_v24 = vld [vmem:[#allocation2 + $0xd4] sm:$0xff]  }
 0x1b6   :  { %3837 = vmatprep.subr.bf16.mxu0 %v4295_v14 }
 0x1b7   :  { %3932 = vmatpush3.bf16.msra.mxu1 %v4293_v4  ;;  %v4354_v4 = vld [vmem:[#allocation2 + $0xd0] sm:$0xff]  }
 0x1b8   :  { %3822 = vmatmul.mubr.bf16.gmra.mrb[24].mxu0 %v4294_v43  ;;  %3933 = vmatprep.subr.bf16.mxu1 %v4297_v17  ;;  %v4360_v43 = vld [vmem:[#allocation2 + $0xe0] sm:$0xff]  }
 0x1b9   :  { %3825 = vmatprep.mubr.bf16.mxu0 %v4296_v44  ;;  %3838 = vmatpush3.bf16.msra.mxu0 %v4295_v14  ;;  %v4355_v14 = vld [vmem:[#allocation2 + $0xd8] sm:$0xff]   ;;  %v4362_v44 = vld [vmem:[#allocation2 + $0xe4] sm:$0xff]  }
 0x1ba   :  { %3839 = vmatprep.subr.bf16.mxu0 %v4299_v38  ;;  %3918 = vmatmul.mubr.bf16.gmra.mrb[8].mxu1 %v4298_v48  ;;  %v4365_v48 = vld [vmem:[#allocation3 + $0x1c0] sm:$0xff]  }
 0x1bb   :  { %3934 = vmatpush3.bf16.msra.mxu1 %v4297_v17  ;;  %3921 = vmatprep.mubr.bf16.mxu1 %v4300_v45  ;;  %v4358_v17 = vld [vmem:[#allocation2 + $0xdc] sm:$0xff]   ;;  %v4366_v45 = vld [vmem:[#allocation2 + $0x10] sm:$0xff]  }
 0x1bc   :  { %3935 = vmatprep.subr.bf16.mxu1 %v4301_v46 }
 0x1bd   :  { %3840 = vmatpush3.bf16.msra.mxu0 %v4299_v38  ;;  %v4361_v38 = vld [vmem:[#allocation3 + $0x1b0] sm:$0xff]  }
 0x1be   :  { %3841 = vmatprep.subr.bf16.mxu0 %v4303_v47 }
 0x1bf   :  { %3936 = vmatpush3.bf16.msra.mxu1 %v4301_v46  ;;  %v4364_v46 = vld [vmem:[#allocation3 + $0x1b8] sm:$0xff]  }
 0x1c0   :  { %3826 = vmatmul.mubr.bf16.gmra.mrb[28].mxu0 %v4302_v27  ;;  %3937 = vmatprep.subr.bf16.mxu1 %v4305_v49  ;;  %v4369_v27 = vld [vmem:[#allocation3 + $0x1d0] sm:$0xff]  }
 0x1c1   :  { %3845 = vmatprep.mubr.bf16.mxu0 %v4304_v25  ;;  %3842 = vmatpush3.bf16.msra.mxu0 %v4303_v47  ;;  %v4363_v47 = vld [vmem:[#allocation2 + $0x8] sm:$0xff]   ;;  %v4370_v25 = vld [vmem:[#allocation2 + $0x20] sm:$0xff]  }
 0x1c2   :  { %3843 = vmatprep.subr.bf16.mxu0 %v4307_v51  ;;  %3922 = vmatmul.mubr.bf16.gmra.mrb[12].mxu1 %v4306_v21  ;;  %v4373_v21 = vld [vmem:[#allocation3 + $0x1e0] sm:$0xff]  }
 0x1c3   :  { %3938 = vmatpush3.bf16.msra.mxu1 %v4305_v49  ;;  %3941 = vmatprep.mubr.bf16.mxu1 %v4308_v26  ;;  %v4368_v49 = vld [vmem:[#allocation3 + $0x1c8] sm:$0xff]  }
 0x1c4   :  { %3939 = vmatprep.subr.bf16.mxu1 %v4309_v11  ;;  %v4374_v26 = vld [vmem:[#allocation2 + $0x38] sm:$0xff]  }
 0x1c5   :  { %3844 = vmatpush3.bf16.msra.mxu0 %v4307_v51  ;;  %v4367_v51 = vld [vmem:[#allocation2 + $0x18] sm:$0xff]  }
 0x1c6   :  { %3861 = vmatprep.subr.bf16.mxu0 %v4311_v12 }
 0x1c7   :  { %3940 = vmatpush3.bf16.msra.mxu1 %v4309_v11  ;;  %v4372_v11 = vld [vmem:[#allocation3 + $0x1d8] sm:$0xff]  }
 0x1c8   :  { %3846 = vmatmul.mubr.bf16.vlgmr.msra.gmra.mrb[16].mxu0 %v4310_v29  ;;  %3957 = vmatprep.subr.bf16.mxu1 %v4313_v28  ;;  %v4377_v29 = vld [vmem:[#allocation3 + $0x1f0] sm:$0xff]  }
 0x1c9   :  { %3849 = vmatprep.mubr.bf16.mxu0 %v4312_v30  ;;  %3862 = vmatpush3.bf16.msra.mxu0 %v4311_v12  ;;  %v4371_v12 = vld [vmem:[#allocation2 + $0x30] sm:$0xff]   ;;  %v4378_v30 = vld [vmem:[#allocation2 + $0x48] sm:$0xff]  }
 0x1ca   :  { %3863 = vmatprep.subr.bf16.mxu0 %v4315_v52  ;;  %3942 = vmatmul.mubr.bf16.vlgmr.msra.gmra.mrb[0].mxu1 %v4314_v13  ;;  %v4381_v13 = vld [vmem:[#allocation3 + $0x200] sm:$0xff]  }
 0x1cb   :  { %3958 = vmatpush3.bf16.msra.mxu1 %v4313_v28  ;;  %3945 = vmatprep.mubr.bf16.mxu1 %v4316_v15  ;;  %v4376_v28 = vld [vmem:[#allocation3 + $0x1e8] sm:$0xff]   ;;  %v4382_v15 = vld [vmem:[#allocation2 + $0x60] sm:$0xff]  }
 0x1cc   :  { %3959 = vmatprep.subr.bf16.mxu1 %v4317_v9 }
 0x1cd   :  { %3864 = vmatpush3.bf16.msra.mxu0 %v4315_v52  ;;  %v4375_v52 = vld [vmem:[#allocation2 + $0x40] sm:$0xff]  }
 0x1ce   :  { %3865 = vmatprep.subr.bf16.mxu0 %v4319_v10 }
 0x1cf   :  { %3960 = vmatpush3.bf16.msra.mxu1 %v4317_v9  ;;  %v4380_v9 = vld [vmem:[#allocation3 + $0x1f8] sm:$0xff]  }
 0x1d0   :  { %3850 = vmatmul.mubr.bf16.gmra.mrb[20].mxu0 %v4318_v19  ;;  %3961 = vmatprep.subr.bf16.mxu1 %v4321_v16  ;;  %v4385_v19 = vld [vmem:[#allocation3 + $0x210] sm:$0xff]  }
 0x1d1   :  { %3853 = vmatprep.mubr.bf16.mxu0 %v4320_v20  ;;  %3866 = vmatpush3.bf16.msra.mxu0 %v4319_v10  ;;  %v4379_v10 = vld [vmem:[#allocation2 + $0x58] sm:$0xff]   ;;  %v4386_v20 = vld [vmem:[#allocation2 + $0x70] sm:$0xff]  }
 0x1d2   :  { %3867 = vmatprep.subr.bf16.mxu0 %v4323_v18  ;;  %3946 = vmatmul.mubr.bf16.gmra.mrb[4].mxu1 %v4322_v33  ;;  %v4389_v33 = vld [vmem:[#allocation3 + $0x220] sm:$0xff]  }
 0x1d3   :  { %3962 = vmatpush3.bf16.msra.mxu1 %v4321_v16  ;;  %3949 = vmatprep.mubr.bf16.mxu1 %v4324_v34  ;;  %v4384_v16 = vld [vmem:[#allocation3 + $0x208] sm:$0xff]   ;;  %v4390_v34 = vld [vmem:[#allocation2 + $0x88] sm:$0xff]  }
 0x1d4   :  { %3963 = vmatprep.subr.bf16.mxu1 %v4325_v31 }
 0x1d5   :  { %3868 = vmatpush3.bf16.msra.mxu0 %v4323_v18  ;;  %v4383_v18 = vld [vmem:[#allocation2 + $0x68] sm:$0xff]  }
 0x1d6   :  { %3869 = vmatprep.subr.bf16.mxu0 %v4327_v32 }
 0x1d7   :  { %3964 = vmatpush3.bf16.msra.mxu1 %v4325_v31  ;;  %v4388_v31 = vld [vmem:[#allocation3 + $0x218] sm:$0xff]  }
 0x1d8   :  { %3854 = vmatmul.mubr.bf16.gmra.mrb[24].mxu0 %v4326_v23  ;;  %3965 = vmatprep.subr.bf16.mxu1 %v4329_v36  ;;  %v4393_v23 = vld [vmem:[#allocation3 + $0x230] sm:$0xff]  }
 0x1d9   :  { %3857 = vmatprep.mubr.bf16.mxu0 %v4328_v40  ;;  %3870 = vmatpush3.bf16.msra.mxu0 %v4327_v32  ;;  %v4387_v32 = vld [vmem:[#allocation2 + $0x80] sm:$0xff]   ;;  %v4394_v40 = vld [vmem:[#allocation2 + $0x98] sm:$0xff]  }
 0x1da   :  { %3871 = vmatprep.subr.bf16.mxu0 %v4331_v39  ;;  %3950 = vmatmul.mubr.bf16.gmra.mrb[8].mxu1 %v4330_v35  ;;  %v4395_v35 = vld [vmem:[#allocation2 + $0xa8] sm:$0xff]  }
 0x1db   :  { %3966 = vmatpush3.bf16.msra.mxu1 %v4329_v36  ;;  %3953 = vmatprep.mubr.bf16.mxu1 %v4332_v53  ;;  %v4392_v36 = vld [vmem:[#allocation3 + $0x228] sm:$0xff]   ;;  %v4397_v53 = vld [vmem:[#allocation2 + $0xb0] sm:$0xff]  }
 0x1dc   :  { %3967 = vmatprep.subr.bf16.mxu1 %v4333_v41 }
 0x1dd   :  { %3872 = vmatpush3.bf16.msra.mxu0 %v4331_v39  ;;  %v4391_v39 = vld [vmem:[#allocation2 + $0x90] sm:$0xff]  }
 0x1de   :  { %3873 = vmatprep.subr.bf16.mxu0 %v4335_v50 }
 0x1df   :  { %3968 = vmatpush3.bf16.msra.mxu1 %v4333_v41  ;;  %v4396_v41 = vld [vmem:[#allocation3 + $0x238] sm:$0xff]  }
 0x1e0   :  { %3858 = vmatmul.mubr.bf16.gmra.mrb[28].mxu0 %v4334_v22  ;;  %3969 = vmatprep.subr.bf16.mxu1 %v4337_v5  ;;  %v4401_v22 = vld [vmem:[#allocation2 + $0xd8] sm:$0xff]  }
 0x1e1   :  { %3874 = vmatpush3.bf16.msra.mxu0 %v4335_v50  ;;  %3877 = vmatprep.mubr.bf16.mxu0 %v4336_v54  ;;  %v4398_v50 = vld [vmem:[#allocation2 + $0xb8] sm:$0xff]   ;;  %v4402_v54 = vld [vmem:[#allocation2 + $0xe0] sm:$0xff]  }
 0x1e2   :  { %3875 = vmatprep.subr.bf16.mxu0 %v4339_v6  ;;  %3954 = vmatmul.mubr.bf16.gmra.mrb[12].mxu1 %v4338_v56 }
 0x1e3   :  { %3970 = vmatpush3.bf16.msra.mxu1 %v4337_v5  ;;  %3973 = vmatprep.mubr.bf16.mxu1 %v4340_v57  ;;  %v4399_v5 = vld [vmem:[#allocation2 + $0xc0] sm:$0xff]  }
 0x1e4   :  { %3971 = vmatprep.subr.bf16.mxu1 %v4341_v55 }
 0x1e5   :  { %3876 = vmatpush3.bf16.msra.mxu0 %v4339_v6  ;;  %v4400_v6 = vld [vmem:[#allocation2 + $0xd0] sm:$0xff]  }
 0x1e7   :  { %3972 = vmatpush3.bf16.msra.mxu1 %v4341_v55  ;;  %v4403_v55 = vld [vmem:[#allocation2 + $0xe8] sm:$0xff]  }
 0x1e8   :  { %3878 = vmatmul.mubr.bf16.vlgmr.msra.gmra.mrb[16].mxu0 %v4342_v58  ;;  %3989 = vmatprep.subr.bf16.mxu1 %v4344_v8 }
 0x1e9   :  { %3881 = vmatprep.mubr.bf16.mxu0 %v4343_v59 }
 0x1ea   :  { %3974 = vmatmul.mubr.bf16.vlgmr.msra.gmra.mrb[0].mxu1 %v4345_v60 }
 0x1eb   :  { %3990 = vmatpush3.bf16.msra.mxu1 %v4344_v8  ;;  %3977 = vmatprep.mubr.bf16.mxu1 %v4346_v62 }
 0x1ec   :  { %3991 = vmatprep.subr.bf16.mxu1 %v4347_v61 }
 0x1ef   :  { %3992 = vmatpush3.bf16.msra.mxu1 %v4347_v61 }
 0x1f0   :  { %3882 = vmatmul.mubr.bf16.gmra.mrb[20].mxu0 %v4348_v0  ;;  %3993 = vmatprep.subr.bf16.mxu1 %v4350_v63 }
 0x1f1   :  { %3885 = vmatprep.mubr.bf16.mxu0 %v4349_v7 }
 0x1f2   :  { %3978 = vmatmul.mubr.bf16.gmra.mrb[4].mxu1 %v4351_v37 }
 0x1f3   :  { %3994 = vmatpush3.bf16.msra.mxu1 %v4350_v63  ;;  %3981 = vmatprep.mubr.bf16.mxu1 %v4352_v2 }
 0x1f4   :  { %3995 = vmatprep.subr.bf16.mxu1 %v4353_v1 }
 0x1f7   :  { %3996 = vmatpush3.bf16.msra.mxu1 %v4353_v1 }
 0x1f8   :  { %3886 = vmatmul.mubr.bf16.gmra.mrb[24].mxu0 %v4354_v4  ;;  %3997 = vmatprep.subr.bf16.mxu1 %v4356_v3 }
 0x1f9   :  { %3889 = vmatprep.mubr.bf16.mxu0 %v4355_v14  ;;  %v4404_v14 = vld [vmem:[%s4987_s3] sm:$0xff]  }
 0x1fa   :  { %3982 = vmatmul.mubr.bf16.gmra.mrb[8].mxu1 %v4357_v24  ;;  %v4405_v24 = vld [vmem:[%s4987_s3 + $0x8] sm:$0xff]   ;;  %4085 = vmatprep.subr.bf16.mxu0 %v4404_v14 }
 0x1fb   :  { %3998 = vmatpush3.bf16.msra.mxu1 %v4356_v3  ;;  %3985 = vmatprep.mubr.bf16.mxu1 %v4358_v17  ;;  %v4407_v17 = vld [vmem:[%s4987_s3 + $0x18] sm:$0xff]  }
 0x1fc   :  { %3999 = vmatprep.subr.bf16.mxu1 %v4359_v42  ;;  %4086 = vmatpush3.bf16.msra.mxu0 %v4404_v14 }
 0x1fd   :  { %4087 = vmatprep.subr.bf16.mxu0 %v4405_v24 }
 0x1ff   :  { %4000 = vmatpush3.bf16.msra.mxu1 %v4359_v42  ;;  %v4406_v42 = vld [vmem:[%s4987_s3 + $0x10] sm:$0xff]  }
 0x200   :  { %3890 = vmatmul.mubr.bf16.gmra.mrb[28].mxu0 %v4360_v43  ;;  %4001 = vmatprep.subr.bf16.mxu1 %v4361_v38 }
 0x201   :  { %4088 = vmatpush3.bf16.msra.mxu0 %v4405_v24 }
 0x202   :  { %3986 = vmatmul.mubr.bf16.gmra.mrb[12].mxu1 %v4362_v44  ;;  %4089 = vmatprep.subr.bf16.mxu0 %v4406_v42 }
 0x203   :  { %4002 = vmatpush3.bf16.msra.mxu1 %v4361_v38  ;;  %4005 = vmatprep.mubr.bf16.mxu1 %v4363_v47 }
 0x204   :  { %4003 = vmatprep.subr.bf16.mxu1 %v4364_v46 }
 0x205   :  { %4090 = vmatpush3.bf16.msra.mxu0 %v4406_v42 }
 0x206   :  { %4091 = vmatprep.subr.bf16.mxu0 %v4407_v17 }
 0x207   :  { %4004 = vmatpush3.bf16.msra.mxu1 %v4364_v46  ;;  %v4408_v46 = vld [vmem:[%s4987_s3 + $0x20] sm:$0xff]  }
 0x208   :  { %4021 = vmatprep.subr.bf16.mxu1 %v4365_v48 }
 0x209   :  { %4092 = vmatpush3.bf16.msra.mxu0 %v4407_v17 }
 0x20a   :  { %4006 = vmatmul.mubr.bf16.vlgmr.msra.gmra.mrb[0].mxu1 %v4366_v45  ;;  %4093 = vmatprep.subr.bf16.mxu0 %v4408_v46 }
 0x20b   :  { %4022 = vmatpush3.bf16.msra.mxu1 %v4365_v48  ;;  %4009 = vmatprep.mubr.bf16.mxu1 %v4367_v51 }
 0x20c   :  { %4023 = vmatprep.subr.bf16.mxu1 %v4368_v49 }
 0x20d   :  { %4094 = vmatpush3.bf16.msra.mxu0 %v4408_v46 }
 0x20f   :  { %4024 = vmatpush3.bf16.msra.mxu1 %v4368_v49 }
 0x210   :  { %4025 = vmatprep.subr.bf16.mxu1 %v4369_v27 }
 0x212   :  { %4010 = vmatmul.mubr.bf16.gmra.mrb[4].mxu1 %v4370_v25 }
 0x213   :  { %4026 = vmatpush3.bf16.msra.mxu1 %v4369_v27  ;;  %4013 = vmatprep.mubr.bf16.mxu1 %v4371_v12  ;;  %v4409_v27 = vld [vmem:[%s4987_s3 + $0x28] sm:$0xff]  }
 0x214   :  { %4027 = vmatprep.subr.bf16.mxu1 %v4372_v11  ;;  %4095 = vmatprep.subr.bf16.mxu0 %v4409_v27 }
 0x215   :  { %4096 = vmatpush3.bf16.msra.mxu0 %v4409_v27 }
 0x217   :  { %4028 = vmatpush3.bf16.msra.mxu1 %v4372_v11 }
 0x218   :  { %4029 = vmatprep.subr.bf16.mxu1 %v4373_v21 }
 0x21a   :  { %4014 = vmatmul.mubr.bf16.gmra.mrb[8].mxu1 %v4374_v26 }
 0x21b   :  { %4030 = vmatpush3.bf16.msra.mxu1 %v4373_v21  ;;  %4017 = vmatprep.mubr.bf16.mxu1 %v4375_v52 }
 0x21c   :  { %4031 = vmatprep.subr.bf16.mxu1 %v4376_v28 }
 0x21f   :  { %4032 = vmatpush3.bf16.msra.mxu1 %v4376_v28  ;;  %v4410_v28 = vld [vmem:[%s4987_s3 + $0x30] sm:$0xff]  }
 0x220   :  { %4033 = vmatprep.subr.bf16.mxu1 %v4377_v29  ;;  %4097 = vmatprep.subr.bf16.mxu0 %v4410_v28 }
 0x221   :  { %4098 = vmatpush3.bf16.msra.mxu0 %v4410_v28 }
 0x222   :  { %4018 = vmatmul.mubr.bf16.gmra.mrb[12].mxu1 %v4378_v30 }
 0x223   :  { %4034 = vmatpush3.bf16.msra.mxu1 %v4377_v29  ;;  %4037 = vmatprep.mubr.bf16.mxu1 %v4379_v10 }
 0x224   :  { %4035 = vmatprep.subr.bf16.mxu1 %v4380_v9 }
 0x227   :  { %4036 = vmatpush3.bf16.msra.mxu1 %v4380_v9 }
 0x228   :  { %4053 = vmatprep.subr.bf16.mxu1 %v4381_v13 }
 0x22a   :  { %4038 = vmatmul.mubr.bf16.vlgmr.msra.gmra.mrb[0].mxu1 %v4382_v15 }
 0x22b   :  { %4054 = vmatpush3.bf16.msra.mxu1 %v4381_v13  ;;  %4041 = vmatprep.mubr.bf16.mxu1 %v4383_v18 }
 0x22c   :  { %4055 = vmatprep.subr.bf16.mxu1 %v4384_v16 }
 0x22f   :  { %4056 = vmatpush3.bf16.msra.mxu1 %v4384_v16  ;;  %v4411_v16 = vld [vmem:[%s4987_s3 + $0x38] sm:$0xff]  }
 0x230   :  { %4057 = vmatprep.subr.bf16.mxu1 %v4385_v19  ;;  %4099 = vmatprep.subr.bf16.mxu0 %v4411_v16 }
 0x231   :  { %4100 = vmatpush3.bf16.msra.mxu0 %v4411_v16 }
 0x232   :  { %4042 = vmatmul.mubr.bf16.gmra.mrb[4].mxu1 %v4386_v20 }
 0x233   :  { %4058 = vmatpush3.bf16.msra.mxu1 %v4385_v19  ;;  %4045 = vmatprep.mubr.bf16.mxu1 %v4387_v32 }
 0x234   :  { %4059 = vmatprep.subr.bf16.mxu1 %v4388_v31 }
 0x237   :  { %4060 = vmatpush3.bf16.msra.mxu1 %v4388_v31 }
 0x238   :  { %4061 = vmatprep.subr.bf16.mxu1 %v4389_v33 }
 0x23a   :  { %4046 = vmatmul.mubr.bf16.gmra.mrb[8].mxu1 %v4390_v34 }
 0x23b   :  { %4062 = vmatpush3.bf16.msra.mxu1 %v4389_v33  ;;  %4049 = vmatprep.mubr.bf16.mxu1 %v4391_v39 }
 0x23c   :  { %4063 = vmatprep.subr.bf16.mxu1 %v4392_v36 }
 0x23f   :  { %4064 = vmatpush3.bf16.msra.mxu1 %v4392_v36 }
 0x240   :  { %4065 = vmatprep.subr.bf16.mxu1 %v4393_v23 }
 0x242   :  { %4050 = vmatmul.mubr.bf16.gmra.mrb[12].mxu1 %v4394_v40 }
 0x243   :  { %4066 = vmatpush3.bf16.msra.mxu1 %v4393_v23  ;;  %4069 = vmatprep.mubr.bf16.mxu1 %v4395_v35 }
 0x244   :  { %4067 = vmatprep.subr.bf16.mxu1 %v4396_v41 }
 0x247   :  { %4068 = vmatpush3.bf16.msra.mxu1 %v4396_v41 }
 0x24a   :  { %4070 = vmatmul.mubr.bf16.vlgmr.msra.gmra.mrb[0].mxu1 %v4397_v53 }
 0x24b   :  { %4073 = vmatprep.mubr.bf16.mxu1 %v4398_v50 }
 0x252   :  { %4074 = vmatmul.mubr.bf16.gmra.mrb[4].mxu1 %v4399_v5 }
 0x253   :  { %4077 = vmatprep.mubr.bf16.mxu1 %v4400_v6 }
 0x25a   :  { %4078 = vmatmul.mubr.bf16.gmra.mrb[8].mxu1 %v4401_v22 }
 0x25b   :  { %4081 = vmatprep.mubr.bf16.mxu1 %v4402_v54 }
 0x262   :  { %4082 = vmatmul.mubr.bf16.gmra.mrb[12].mxu1 %v4403_v55 }
 0x2bb   :  { %v3879_v56 = vpop.f32.mrb[16].mxu0 }
 0x2bc   :  { %v1235_v57 = vpop.f32.mrb[17].mxu0 }
 0x2bd   :  { %v3880_v8 = vpop.f32.mrb[18].mxu0 }
 0x2be   :  { %v1238_v58 = vpop.f32.mrb[19].mxu0 }
 0x2c3   :  { %v3883_v59 = vpop.f32.mrb[20].mxu0 }
 0x2c4   :  { %v1251_v60 = vpop.f32.mrb[21].mxu0 }
 0x2c5   :  { %v3884_v61 = vpop.f32.mrb[22].mxu0 }
 0x2c6   :  { %v1254_v62 = vpop.f32.mrb[23].mxu0 }
 0x2cb   :  { %v3887_v63 = vpop.f32.mrb[24].mxu0 }
 0x2cc   :  { %v1267_v0 = vpop.f32.mrb[25].mxu0 }
 0x2cd   :  { %v3888_v7 = vpop.f32.mrb[26].mxu0 }
 0x2ce   :  { %v1270_v37 = vpop.f32.mrb[27].mxu0 }
 0x2d3   :  { %v4788_v1 = vpop.f32.mrb[28].mxu0 }
 0x2d4   :  { %v4790_v2 = vpop.f32.mrb[29].mxu0 }
 0x2d5   :  { %v4792_v3 = vpop.f32.mrb[30].mxu0 }
 0x2d6   :  { %v4794_v4 = vpop.f32.mrb[31].mxu0 }
 0x31d   :  { %v4071_v38 = vpop.f32.mrb[0].mxu1 }
 0x31e   :  { %v4808_v43 = vadd.f32 %v4071_v38, %v3879_v56  ;;  %v2690_v44 = vpop.f32.mrb[1].mxu1 }
 0x31f   :  { %v4813_v47 = vadd.f32 %v2690_v44, %v1235_v57  ;;  %v4072_v48 = vpop.f32.mrb[2].mxu1 }
 0x320   :  { %v4815_v45 = vadd.f32 %v4072_v48, %v3880_v8  ;;  %v2693_v49 = vpop.f32.mrb[3].mxu1 }
 0x321   :  { %v4120_v51 = vadd.f32 %v2693_v49, %v1238_v58 }
 0x323   :  { %v2771_v25 = vadd.f32 %v4120_v51, %v4813_v47 }
 0x325   :  { %v2772_v11 = vadd.f32 %v4808_v43, %v2771_v25  ;;  %v4075_v12 = vpop.f32.mrb[4].mxu1 }
 0x326   :  { %v4121_v21 = vadd.f32 %v4075_v12, %v3883_v59  ;;  %v2706_v26 = vpop.f32.mrb[5].mxu1 }
 0x327   :  { %v4122_v52 = vadd.f32 %v2706_v26, %v1251_v60  ;;  %v2773_v29 = vadd.f32 %v4815_v45, %v2772_v11  ;;  %v4076_v30 = vpop.f32.mrb[6].mxu1 }
 0x328   :  { %v4123_v9 = vadd.f32 %v4076_v30, %v3884_v61  ;;  %v2709_v10 = vpop.f32.mrb[7].mxu1 }
 0x329   :  { %v2774_v13 = vadd.f32 %v4122_v52, %v2773_v29  ;;  %v4124_v15 = vadd.f32 %v2709_v10, %v1254_v62 }
 0x32b   :  { %v2775_v18 = vadd.f32 %v4124_v15, %v2774_v13 }
 0x32d   :  { %v2776_v19 = vadd.f32 %v4121_v21, %v2775_v18  ;;  %v4079_v20 = vpop.f32.mrb[8].mxu1 }
 0x32e   :  { %v4125_v31 = vadd.f32 %v4079_v20, %v3887_v63  ;;  %v2722_v32 = vpop.f32.mrb[9].mxu1 }
 0x32f   :  { %v4126_v33 = vadd.f32 %v2722_v32, %v1267_v0  ;;  %v2777_v34 = vadd.f32 %v4123_v9, %v2776_v19  ;;  %v4080_v36 = vpop.f32.mrb[10].mxu1 }
 0x330   :  { %v4127_v39 = vadd.f32 %v4080_v36, %v3888_v7  ;;  %v2725_v23 = vpop.f32.mrb[11].mxu1 }
 0x331   :  { %v2778_v40 = vadd.f32 %v4126_v33, %v2777_v34  ;;  %v4128_v41 = vadd.f32 %v2725_v23, %v1270_v37 }
 0x333   :  { %v2779_v35 = vadd.f32 %v4128_v41, %v2778_v40 }
 0x335   :  { %v2780_v53 = vadd.f32 %v4125_v31, %v2779_v35  ;;  %v4083_v50 = vpop.f32.mrb[12].mxu1 }
 0x336   :  { %v4129_v5 = vadd.f32 %v4083_v50, %v4788_v1  ;;  %v2738_v6 = vpop.f32.mrb[13].mxu1 }
 0x337   :  { %v4130_v22 = vadd.f32 %v2738_v6, %v4790_v2  ;;  %v2781_v54 = vadd.f32 %v4127_v39, %v2780_v53  ;;  %v4084_v55 = vpop.f32.mrb[14].mxu1 }
 0x338   :  { %v4131_v56 = vadd.f32 %v4084_v55, %v4792_v3  ;;  %v2741_v57 = vpop.f32.mrb[15].mxu1 }
 0x339   :  { %v2782_v8 = vadd.f32 %v4130_v22, %v2781_v54  ;;  %v4132_v58 = vadd.f32 %v2741_v57, %v4794_v4 }
 0x33b   :  { %v2783_v59 = vadd.f32 %v4132_v58, %v2782_v8 }
 0x33d   :  { %v2784_v60 = vadd.f32 %v4129_v5, %v2783_v59 }
 0x33f   :  { %v2785_v61 = vadd.f32 %v4131_v56, %v2784_v60 }
 0x341   :  { %v2786_v62 = vrot.slane %v2785_v61, 4 }
 0x343   :  { %v2787_v63 = vadd.f32 %v2786_v62, %v2785_v61  ;;  %v4871_v61 = vld [vmem:[%s4990_s6] ss:$0 sm:$0xff] }
 0x345   :  { %v2788_v0 = vrot.slane %v2787_v63, 2 }
 0x347   :  { %v2789_v7 = vadd.f32 %v2788_v0, %v2787_v63 }
 0x349   :  { %v2790_v37 = vrot.slane %v2789_v7, 1 }
 0x34b   :  { %v2791_v1 = vadd.f32 %v2790_v37, %v2789_v7  ;;  %v4876_v37 = vld [vmem:[%s4991_s7] ss:$0 sm:$0xff] }
 0x34d   :  { %v2792_v14 = vmul.f32 0.0078125, %v2791_v1 }
 0x34f   :  { %v2793_v2 = vsub.f32 %v4813_v47, %v2792_v14  ;;  %v2794_v24 = vsub.f32 %v4120_v51, %v2792_v14  ;;  %v2795_v42 = vsub.f32 %v4808_v43, %v2792_v14  ;;  %v2796_v3 = vsub.f32 %v4815_v45, %v2792_v14 }
 0x350   :  { %v2797_v17 = vsub.f32 %v4122_v52, %v2792_v14  ;;  %v2798_v38 = vsub.f32 %v4124_v15, %v2792_v14  ;;  %v2799_v4 = vsub.f32 %v4121_v21, %v2792_v14  ;;  %v4836_v44 = vsub.f32 %v4123_v9, %v2792_v14 }
 0x351   :  { %v4838_v46 = vsub.f32 %v4126_v33, %v2792_v14  ;;  %v4840_v48 = vsub.f32 %v4128_v41, %v2792_v14  ;;  %v4842_v49 = vsub.f32 %v4125_v31, %v2792_v14  ;;  %v4844_v27 = vsub.f32 %v4127_v39, %v2792_v14 }
 0x352   :  { %v4846_v25 = vsub.f32 %v4130_v22, %v2792_v14  ;;  %v2806_v47 = vsub.f32 %v4132_v58, %v2792_v14  ;;  %v4848_v51 = vsub.f32 %v4129_v5, %v2792_v14  ;;  %v4850_v43 = vsub.f32 %v4131_v56, %v2792_v14 }
 0x353   :  { %v2809_v45 = vmul.f32 %v2793_v2, %v2793_v2  ;;  %v2810_v11 = vmul.f32 %v2794_v24, %v2794_v24  ;;  %v2811_v12 = vmul.f32 %v2795_v42, %v2795_v42  ;;  %v2812_v26 = vmul.f32 %v2796_v3, %v2796_v3 }
 0x354   :  { %v2813_v52 = vmul.f32 %v2797_v17, %v2797_v17  ;;  %v2814_v30 = vmul.f32 %v2798_v38, %v2798_v38  ;;  %v2815_v10 = vmul.f32 %v2799_v4, %v2799_v4  ;;  %v2816_v15 = vmul.f32 %v4836_v44, %v4836_v44 }
 0x355   :  { %v2825_v21 = vadd.f32 %v2810_v11, %v2809_v45  ;;  %v2817_v18 = vmul.f32 %v4838_v46, %v4838_v46  ;;  %v2818_v20 = vmul.f32 %v4840_v48, %v4840_v48  ;;  %v2819_v32 = vmul.f32 %v4842_v49, %v4842_v49 }
 0x356   :  { %v2820_v34 = vmul.f32 %v4844_v27, %v4844_v27  ;;  %v2821_v39 = vmul.f32 %v4846_v25, %v4846_v25  ;;  %v2822_v40 = vmul.f32 %v2806_v47, %v2806_v47  ;;  %v2823_v35 = vmul.f32 %v4848_v51, %v4848_v51 }
 0x357   :  { %v2826_v28 = vadd.f32 %v2825_v21, %v2811_v12  ;;  %v2824_v50 = vmul.f32 %v4850_v43, %v4850_v43 }
 0x359   :  { %v2827_v29 = vadd.f32 %v2826_v28, %v2812_v26 }
 0x35b   :  { %v2828_v9 = vadd.f32 %v2827_v29, %v2813_v52 }
 0x35d   :  { %v2829_v13 = vadd.f32 %v2828_v9, %v2814_v30 }
 0x35f   :  { %v2830_v16 = vadd.f32 %v2829_v13, %v2815_v10 }
 0x361   :  { %v2831_v19 = vadd.f32 %v2830_v16, %v2816_v15 }
 0x363   :  { %v2832_v31 = vadd.f32 %v2831_v19, %v2817_v18 }
 0x365   :  { %v2833_v33 = vadd.f32 %v2832_v31, %v2818_v20 }
 0x367   :  { %v2834_v36 = vadd.f32 %v2833_v33, %v2819_v32 }
 0x369   :  { %v2835_v23 = vadd.f32 %v2834_v36, %v2820_v34 }
 0x36b   :  { %v2836_v41 = vadd.f32 %v2835_v23, %v2821_v39 }
 0x36d   :  { %v2837_v53 = vadd.f32 %v2836_v41, %v2822_v40 }
 0x36f   :  { %v2838_v5 = vadd.f32 %v2837_v53, %v2823_v35 }
 0x371   :  { %v2839_v6 = vadd.f32 %v2838_v5, %v2824_v50 }
 0x373   :  { %v2840_v22 = vrot.slane %v2839_v6, 4 }
 0x375   :  { %v2841_v54 = vadd.f32 %v2840_v22, %v2839_v6 }
 0x377   :  { %v2842_v55 = vrot.slane %v2841_v54, 2 }
 0x379   :  { %v2843_v56 = vadd.f32 %v2842_v55, %v2841_v54 }
 0x37b   :  { %v2844_v57 = vrot.slane %v2843_v56, 1 }
 0x37d   :  { %v2845_v8 = vadd.f32 %v2844_v57, %v2843_v56 }
 0x37f   :  { %v2846_v58 = vmul.f32 0.0078125, %v2845_v8 }
 0x381   :  { %v2847_v59 = vadd.f32 1e-05, %v2846_v58 }
 0x383   :  { %4414 = vrsqrt.f32 %v2847_v59 }
 0x38d   :  { %v4415_v60 = vpop.eup %4414 }
 0x38e   :  { %v2862_v62 = vmul.f32 %v4415_v60, %v2806_v47  ;;  %v2849_v63 = vmul.f32 %v4415_v60, %v2793_v2  ;;  %v2850_v0 = vmul.f32 %v4415_v60, %v2794_v24  ;;  %v2851_v7 = vmul.f32 %v4415_v60, %v2795_v42 }
 0x38f   :  { %v2852_v1 = vmul.f32 %v4415_v60, %v2796_v3  ;;  %v2853_v14 = vmul.f32 %v4415_v60, %v2797_v17  ;;  %v2854_v45 = vmul.f32 %v4415_v60, %v2798_v38  ;;  %v2855_v11 = vmul.f32 %v4415_v60, %v2799_v4 }
 0x390   :  { %v2884_v12 = vmul.f32 %v4871_v61, %v2862_v62  ;;  %v2871_v21 = vmul.f32 %v4871_v61, %v2849_v63  ;;  %v2872_v26 = vmul.f32 %v4871_v61, %v2850_v0  ;;  %v2873_v47 = vmul.f32 %v4871_v61, %v2851_v7 }
 0x391   :  { %v2874_v2 = vmul.f32 %v4871_v61, %v2852_v1  ;;  %v2875_v24 = vmul.f32 %v4871_v61, %v2853_v14  ;;  %v2876_v42 = vmul.f32 %v4871_v61, %v2854_v45  ;;  %v2856_v28 = vmul.f32 %v4415_v60, %v4836_v44 }
 0x392   :  { %v2893_v3 = vadd.f32 %v4876_v37, %v2871_v21  ;;  %v2894_v17 = vadd.f32 %v4876_v37, %v2872_v26  ;;  %v2895_v38 = vadd.f32 %v4876_v37, %v2873_v47  ;;  %v2877_v4 = vmul.f32 %v4871_v61, %v2855_v11 }
 0x393   :  { %v2896_v52 = vadd.f32 %v4876_v37, %v2874_v2  ;;  %v2897_v29 = vadd.f32 %v4876_v37, %v2875_v24  ;;  %v2898_v30 = vadd.f32 %v4876_v37, %v2876_v42  ;;  %v2878_v9 = vmul.f32 %v4871_v61, %v2856_v28 }
 0x394   :  { %v2909_v10 = vmax.f32 %v2893_v3, 0.0  ;;  %v2910_v13 = vmax.f32 %v2894_v17, 0.0  ;;  %v2911_v15 = vmax.f32 %v2895_v38, 0.0  ;;  %v2899_v44 = vadd.f32 %v4876_v37, %v2877_v4 }
 0x395   :  { %v2912_v16 = vmax.f32 %v2896_v52, 0.0  ;;  %v2913_v18 = vmax.f32 %v2897_v29, 0.0  ;;  %v2914_v19 = vmax.f32 %v2898_v30, 0.0  ;;  %v2900_v20 = vadd.f32 %v4876_v37, %v2878_v9 }
 0x396   :  { %v2925_v31 = vpack.c.bf16 %v2910_v13, %v2909_v10  ;;  %v2915_v32 = vmax.f32 %v2899_v44, 0.0  ;;  %v2857_v33 = vmul.f32 %v4415_v60, %v4838_v46  ;;  %v2858_v34 = vmul.f32 %v4415_v60, %v4840_v48 }
 0x397   :  { %v2926_v36 = vpack.c.bf16 %v2912_v16, %v2911_v15  ;;  %v2927_v39 = vpack.c.bf16 %v2914_v19, %v2913_v18  ;;  %v2916_v23 = vmax.f32 %v2900_v20, 0.0  ;;  %v2859_v40 = vmul.f32 %v4415_v60, %v4842_v49 }
 0x398   :  { %4101 = vmatprep.mubr.bf16.mxu0 %v2925_v31  ;;  %v2879_v41 = vmul.f32 %v4871_v61, %v2857_v33  ;;  %v2880_v35 = vmul.f32 %v4871_v61, %v2858_v34  ;;  %v2860_v53 = vmul.f32 %v4415_v60, %v4844_v27  ;;  %v2861_v50 = vmul.f32 %v4415_v60, %v4846_v25 }
 0x399   :  { %4102 = vmatmul.mubr.bf16.vlgmr.msra.gmra.mrb[32].mxu0 %v2926_v36  ;;  %v2928_v5 = vpack.c.bf16 %v2916_v23, %v2915_v32  ;;  %v2881_v46 = vmul.f32 %v4871_v61, %v2859_v40  ;;  %v2906_v48 = vadd.f32 %v4876_v37, %v2884_v12  ;;  %v2863_v6 = vmul.f32 %v4415_v60, %v4848_v51 }
 0x39a   :  { %4105 = vmatprep.mubr.bf16.mxu0 %v2927_v39  ;;  %v2901_v49 = vadd.f32 %v4876_v37, %v2879_v41  ;;  %v2902_v22 = vadd.f32 %v4876_v37, %v2880_v35  ;;  %v2882_v54 = vmul.f32 %v4871_v61, %v2860_v53  ;;  %v2883_v55 = vmul.f32 %v4871_v61, %v2861_v50 }
 0x39b   :  { %v2903_v27 = vadd.f32 %v4876_v37, %v2881_v46  ;;  %v2922_v25 = vmax.f32 %v2906_v48, 0.0  ;;  %v2864_v56 = vmul.f32 %v4415_v60, %v4850_v43  ;;  %v2885_v57 = vmul.f32 %v4871_v61, %v2863_v6 }
 0x39c   :  { %v2917_v8 = vmax.f32 %v2901_v49, 0.0  ;;  %v2918_v58 = vmax.f32 %v2902_v22, 0.0  ;;  %v2904_v51 = vadd.f32 %v4876_v37, %v2882_v54  ;;  %v2905_v59 = vadd.f32 %v4876_v37, %v2883_v55 }
 0x39d   :  { %v2919_v62 = vmax.f32 %v2903_v27, 0.0  ;;  %v2886_v63 = vmul.f32 %v4871_v61, %v2864_v56  ;;  %v2907_v0 = vadd.f32 %v4876_v37, %v2885_v57 }
 0x39e   :  { %v2929_v7 = vpack.c.bf16 %v2918_v58, %v2917_v8  ;;  %v2920_v1 = vmax.f32 %v2904_v51, 0.0  ;;  %v2921_v14 = vmax.f32 %v2905_v59, 0.0 }
 0x39f   :  { %v2908_v45 = vadd.f32 %v4876_v37, %v2886_v63  ;;  %v2923_v11 = vmax.f32 %v2907_v0, 0.0 }
 0x3a0   :  { %v2930_v43 = vpack.c.bf16 %v2920_v1, %v2919_v62  ;;  %v2931_v60 = vpack.c.bf16 %v2922_v25, %v2921_v14 }
 0x3a1   :  { %4106 = vmatmul.mubr.bf16.gmra.mrb[36].mxu0 %v2928_v5  ;;  %v2924_v12 = vmax.f32 %v2908_v45, 0.0 }
 0x3a2   :  { %4109 = vmatprep.mubr.bf16.mxu0 %v2929_v7 }
 0x3a3   :  { %v2932_v21 = vpack.c.bf16 %v2924_v12, %v2923_v11 }
 0x3a9   :  { %4110 = vmatmul.mubr.bf16.gmra.mrb[40].mxu0 %v2930_v43 }
 0x3aa   :  { %4113 = vmatprep.mubr.bf16.mxu0 %v2931_v60 }
 0x3b1   :  { %4114 = vmatmul.mubr.bf16.gmra.mrb[44].mxu0 %v2932_v21 }
 0x46c   :  { %v4103_v26 = vpop.f32.mrb[32].mxu0 }
 0x46d   :  { %v3031_v47 = vpop.f32.mrb[33].mxu0 }
 0x46e   :  { %v4104_v61 = vpop.f32.mrb[34].mxu0 }
 0x46f   :  { %v3034_v2 = vpop.f32.mrb[35].mxu0 }
 0x470   :  { %v3096_v24 = vadd.f32 %v3034_v2, %v3031_v47 }
 0x472   :  { %v3097_v42 = vadd.f32 %v4103_v26, %v3096_v24 }
 0x474   :  { %v4107_v28 = vpop.f32.mrb[36].mxu0  ;;  %v3098_v3 = vadd.f32 %v4104_v61, %v3097_v42 }
 0x475   :  { %v3047_v17 = vpop.f32.mrb[37].mxu0 }
 0x476   :  { %v3099_v37 = vadd.f32 %v3098_v3, %v3047_v17  ;;  %v4108_v38 = vpop.f32.mrb[38].mxu0 }
 0x477   :  { %v3050_v4 = vpop.f32.mrb[39].mxu0 }
 0x478   :  { %v3100_v52 = vadd.f32 %v3099_v37, %v3050_v4 }
 0x47a   :  { %v3101_v29 = vadd.f32 %v4107_v28, %v3100_v52 }
 0x47c   :  { %v4111_v30 = vpop.f32.mrb[40].mxu0  ;;  %v3102_v9 = vadd.f32 %v4108_v38, %v3101_v29 }
 0x47d   :  { %v3063_v10 = vpop.f32.mrb[41].mxu0 }
 0x47e   :  { %v3103_v13 = vadd.f32 %v3102_v9, %v3063_v10  ;;  %v4112_v15 = vpop.f32.mrb[42].mxu0 }
 0x47f   :  { %v3066_v44 = vpop.f32.mrb[43].mxu0 }
 0x480   :  { %v3104_v16 = vadd.f32 %v3103_v13, %v3066_v44 }
 0x482   :  { %v3105_v18 = vadd.f32 %v4111_v30, %v3104_v16 }
 0x484   :  { %v4115_v19 = vpop.f32.mrb[44].mxu0  ;;  %v3106_v20 = vadd.f32 %v4112_v15, %v3105_v18 }
 0x485   :  { %v3079_v31 = vpop.f32.mrb[45].mxu0 }
 0x486   :  { %v3107_v32 = vadd.f32 %v3106_v20, %v3079_v31  ;;  %v4116_v33 = vpop.f32.mrb[46].mxu0 }
 0x487   :  { %v3082_v34 = vpop.f32.mrb[47].mxu0 }
 0x488   :  { %v3108_v36 = vadd.f32 %v3107_v32, %v3082_v34 }
 0x48a   :  { %v3109_v39 = vadd.f32 %v4115_v19, %v3108_v36 }
 0x48c   :  { %v3110_v23 = vadd.f32 %v4116_v33, %v3109_v39 }
 0x48e   :  { %v3111_v40 = vrot.slane %v3110_v23, 4 }
 0x490   :  { %v3112_v41 = vadd.f32 %v3111_v40, %v3110_v23 }
 0x492   :  { %v3113_v35 = vrot.slane %v3112_v41, 2 }
 0x494   :  { %v3114_v53 = vadd.f32 %v3113_v35, %v3112_v41 }
 0x496   :  { %v3115_v50 = vrot.slane %v3114_v53, 1 }
 0x498   :  { %v3116_v5 = vadd.f32 %v3115_v50, %v3114_v53  ;;  %v3479_v53 = vld [vmem:[%s4992_s8] ss:$0 sm:$0xff] }
 0x49a   :  { %v3117_v46 = vmul.f32 0.0078125, %v3116_v5 }
 0x49c   :  { %v3118_v48 = vsub.f32 %v3031_v47, %v3117_v46  ;;  %v3119_v6 = vsub.f32 %v3034_v2, %v3117_v46  ;;  %v3120_v49 = vsub.f32 %v4103_v26, %v3117_v46  ;;  %v3121_v22 = vsub.f32 %v4104_v61, %v3117_v46 }
 0x49d   :  { %v3122_v54 = vsub.f32 %v3047_v17, %v3117_v46  ;;  %v3123_v55 = vsub.f32 %v3050_v4, %v3117_v46  ;;  %v3124_v27 = vsub.f32 %v4107_v28, %v3117_v46  ;;  %v3125_v25 = vsub.f32 %v4108_v38, %v3117_v46 }
 0x49e   :  { %v3126_v56 = vsub.f32 %v3063_v10, %v3117_v46  ;;  %v3127_v57 = vsub.f32 %v3066_v44, %v3117_v46  ;;  %v3128_v8 = vsub.f32 %v4111_v30, %v3117_v46  ;;  %v3129_v58 = vsub.f32 %v4112_v15, %v3117_v46 }
 0x49f   :  { %v3130_v51 = vsub.f32 %v3079_v31, %v3117_v46  ;;  %v3131_v59 = vsub.f32 %v3082_v34, %v3117_v46  ;;  %v3132_v62 = vsub.f32 %v4115_v19, %v3117_v46  ;;  %v3133_v63 = vsub.f32 %v4116_v33, %v3117_v46 }
 0x4a0   :  { %v3134_v0 = vmul.f32 %v3118_v48, %v3118_v48  ;;  %v3135_v7 = vmul.f32 %v3119_v6, %v3119_v6  ;;  %v3136_v1 = vmul.f32 %v3120_v49, %v3120_v49  ;;  %v3137_v45 = vmul.f32 %v3121_v22, %v3121_v22 }
 0x4a1   :  { %v3138_v43 = vmul.f32 %v3122_v54, %v3122_v54  ;;  %v3139_v12 = vmul.f32 %v3123_v55, %v3123_v55  ;;  %v3140_v26 = vmul.f32 %v3124_v27, %v3124_v27  ;;  %v3141_v61 = vmul.f32 %v3125_v25, %v3125_v25 }
 0x4a2   :  { %v3150_v14 = vadd.f32 %v3135_v7, %v3134_v0  ;;  %v3142_v24 = vmul.f32 %v3126_v56, %v3126_v56  ;;  %v3143_v28 = vmul.f32 %v3127_v57, %v3127_v57  ;;  %v3144_v17 = vmul.f32 %v3128_v8, %v3128_v8 }
 0x4a3   :  { %v3145_v38 = vmul.f32 %v3129_v58, %v3129_v58  ;;  %v3146_v52 = vmul.f32 %v3130_v51, %v3130_v51  ;;  %v3147_v30 = vmul.f32 %v3131_v59, %v3131_v59  ;;  %v3148_v10 = vmul.f32 %v3132_v62, %v3132_v62 }
 0x4a4   :  { %v3151_v11 = vadd.f32 %v3150_v14, %v3136_v1  ;;  %v3149_v15 = vmul.f32 %v3133_v63, %v3133_v63 }
 0x4a6   :  { %v3152_v60 = vadd.f32 %v3151_v11, %v3137_v45 }
 0x4a8   :  { %v3153_v21 = vadd.f32 %v3152_v60, %v3138_v43 }
 0x4aa   :  { %v3154_v47 = vadd.f32 %v3153_v21, %v3139_v12  ;;  %v3480_v21 = vld [vmem:[%s4993_s9] ss:$0 sm:$0xff] }
 0x4ac   :  { %v3155_v2 = vadd.f32 %v3154_v47, %v3140_v26  ;;  %v3234_v26 = vld [vmem:[%s4984_s0] sm:$0xff] }
 0x4ae   :  { %v3156_v42 = vadd.f32 %v3155_v2, %v3141_v61 }
 0x4b0   :  { %v3157_v3 = vadd.f32 %v3156_v42, %v3142_v24  ;;  %v3235_v42 = vld [vmem:[%s4984_s0 + $0x8] sm:$0xff] }
 0x4b2   :  { %v3158_v37 = vadd.f32 %v3157_v3, %v3143_v28  ;;  %v3236_v28 = vld [vmem:[%s4984_s0 + $0x10] sm:$0xff]  ;;  %v3237_v3 = vld [vmem:[%s4984_s0 + $0x18] sm:$0xff] }
 0x4b4   :  { %v3159_v4 = vadd.f32 %v3158_v37, %v3144_v17 }
 0x4b6   :  { %v3160_v29 = vadd.f32 %v3159_v4, %v3145_v38 }
 0x4b8   :  { %v3161_v9 = vadd.f32 %v3160_v29, %v3146_v52  ;;  %v3238_v52 = vld [vmem:[%s4984_s0 + $0x20] sm:$0xff]  ;;  %v3239_v29 = vld [vmem:[%s4984_s0 + $0x28] sm:$0xff] }
 0x4ba   :  { %v3162_v13 = vadd.f32 %v3161_v9, %v3147_v30  ;;  %v3240_v30 = vld [vmem:[%s4984_s0 + $0x30] sm:$0xff] }
 0x4bc   :  { %v3163_v44 = vadd.f32 %v3162_v13, %v3148_v10 }
 0x4be   :  { %v3164_v16 = vadd.f32 %v3163_v44, %v3149_v15  ;;  %v3241_v44 = vld [vmem:[%s4984_s0 + $0x38] sm:$0xff] }
 0x4c0   :  { %v3165_v18 = vrot.slane %v3164_v16, 4 }
 0x4c2   :  { %v3166_v19 = vadd.f32 %v3165_v18, %v3164_v16  ;;  %v3242_v16 = vld [vmem:[%s4984_s0 + $0x40] sm:$0xff]  ;;  %v3243_v18 = vld [vmem:[%s4984_s0 + $0x48] sm:$0xff] }
 0x4c4   :  { %v3167_v20 = vrot.slane %v3166_v19, 2 }
 0x4c6   :  { %v3168_v31 = vadd.f32 %v3167_v20, %v3166_v19 }
 0x4c8   :  { %v3169_v32 = vrot.slane %v3168_v31, 1 }
 0x4ca   :  { %v3170_v33 = vadd.f32 %v3169_v32, %v3168_v31 }
 0x4cc   :  { %v3171_v34 = vmul.f32 0.0078125, %v3170_v33  ;;  %v3244_v33 = vld [vmem:[%s4984_s0 + $0x50] sm:$0xff] }
 0x4ce   :  { %v3172_v36 = vadd.f32 1e-05, %v3171_v34  ;;  %v3245_v34 = vld [vmem:[%s4984_s0 + $0x58] sm:$0xff] }
 0x4d0   :  { %4416 = vrsqrt.f32 %v3172_v36  ;;  %v3246_v36 = vld [vmem:[%s4984_s0 + $0x60] sm:$0xff] }
 0x4da   :  { %v4417_v39 = vpop.eup %4416 }
 0x4db   :  { %v3174_v23 = vmul.f32 %v4417_v39, %v3118_v48  ;;  %v3175_v40 = vmul.f32 %v4417_v39, %v3119_v6  ;;  %v3176_v41 = vmul.f32 %v4417_v39, %v3120_v49  ;;  %v3177_v35 = vmul.f32 %v4417_v39, %v3121_v22 }
 0x4dc   :  { %v3178_v50 = vmul.f32 %v4417_v39, %v3122_v54  ;;  %v3179_v5 = vmul.f32 %v4417_v39, %v3123_v55  ;;  %v3180_v46 = vmul.f32 %v4417_v39, %v3124_v27  ;;  %v3181_v0 = vmul.f32 %v4417_v39, %v3125_v25 }
 0x4dd   :  { %v3182_v7 = vmul.f32 %v4417_v39, %v3126_v56  ;;  %v3183_v1 = vmul.f32 %v4417_v39, %v3127_v57  ;;  %v3184_v14 = vmul.f32 %v4417_v39, %v3128_v8  ;;  %v3185_v45 = vmul.f32 %v4417_v39, %v3129_v58 }
 0x4de   :  { %v3186_v11 = vmul.f32 %v4417_v39, %v3130_v51  ;;  %v3187_v43 = vmul.f32 %v4417_v39, %v3131_v59  ;;  %v3188_v60 = vmul.f32 %v4417_v39, %v3132_v62  ;;  %v3189_v12 = vmul.f32 %v4417_v39, %v3133_v63  ;;  %v3247_v39 = vld [vmem:[%s4984_s0 + $0x68] sm:$0xff] }
 0x4df   :  { %v3196_v48 = vmul.f32 %v3479_v53, %v3174_v23  ;;  %v3197_v6 = vmul.f32 %v3479_v53, %v3175_v40  ;;  %v3198_v49 = vmul.f32 %v3479_v53, %v3176_v41  ;;  %v3199_v22 = vmul.f32 %v3479_v53, %v3177_v35  ;;  %v3248_v23 = vld [vmem:[%s4984_s0 + $0x70] sm:$0xff]  ;;  %v3249_v40 = vld [vmem:[%s4984_s0 + $0x78] sm:$0xff]  ;;  %s4470_s0 = smov [#allocation6]  }
 0x4e0   :  { %v3200_v54 = vmul.f32 %v3479_v53, %v3178_v50  ;;  %v3201_v55 = vmul.f32 %v3479_v53, %v3179_v5  ;;  %v3202_v27 = vmul.f32 %v3479_v53, %v3180_v46  ;;  %v3203_v25 = vmul.f32 %v3479_v53, %v3181_v0  ;;  %s3303_s1 = sshll.u32 %s4470_s0, 4  ;;  %s3304_s1 = int_to_ptr.vmem [resolvable:$true] %s3303_s1 }
 0x4e1   :  { %v3204_v56 = vmul.f32 %v3479_v53, %v3182_v7  ;;  %v3205_v57 = vmul.f32 %v3479_v53, %v3183_v1  ;;  %v3206_v8 = vmul.f32 %v3479_v53, %v3184_v14  ;;  %v3207_v58 = vmul.f32 %v3479_v53, %v3185_v45  ;;  %s4440_s13 = scalar_lea.vmem %s3304_s1, 2048  ;;  %p4445_p9 = scmp.lt.s32.totalorder %s3304_s1, %s3304_s1 }
 0x4e2   :  { %v3208_v51 = vmul.f32 %v3479_v53, %v3186_v11  ;;  %v3209_v59 = vmul.f32 %v3479_v53, %v3187_v43  ;;  %v3210_v62 = vmul.f32 %v3479_v53, %v3188_v60  ;;  %v3211_v63 = vmul.f32 %v3479_v53, %v3189_v12  ;;  %p4441_p8 = scmp.ne.s32.totalorder %s3304_s1, %s4440_s13  ;;  %p4446_p10 = scmp.lt.s32.totalorder %s4440_s13, %s4440_s13 }
 0x4e3   :  { %v3218_v47 = vadd.f32 %v3480_v21, %v3196_v48  ;;  %v3219_v61 = vadd.f32 %v3480_v21, %v3197_v6  ;;  %v3220_v2 = vadd.f32 %v3480_v21, %v3198_v49  ;;  %v3221_v24 = vadd.f32 %v3480_v21, %v3199_v22 }
 0x4e4   :  { %v3222_v17 = vadd.f32 %v3480_v21, %v3200_v54  ;;  %v3223_v37 = vadd.f32 %v3480_v21, %v3201_v55  ;;  %v3224_v38 = vadd.f32 %v3480_v21, %v3202_v27  ;;  %v3225_v4 = vadd.f32 %v3480_v21, %v3203_v25  ;;  %p4447_p11 = por %p4446_p10, %p4445_p9 }
 0x4e5   :  { %v3226_v9 = vadd.f32 %v3480_v21, %v3204_v56  ;;  %v3227_v10 = vadd.f32 %v3480_v21, %v3205_v57  ;;  %v3228_v13 = vadd.f32 %v3480_v21, %v3206_v8  ;;  %v3229_v15 = vadd.f32 %v3480_v21, %v3207_v58 }
 0x4e6   :  { %v3230_v19 = vadd.f32 %v3480_v21, %v3208_v51  ;;  %v3231_v20 = vadd.f32 %v3480_v21, %v3209_v59  ;;  %v3232_v31 = vadd.f32 %v3480_v21, %v3210_v62  ;;  %v3233_v32 = vadd.f32 %v3480_v21, %v3211_v63  ;;  %p4448_p12 = pnand %p4447_p11, %p4441_p8 }
 0x4e7   :  { %v3250_v41 = vadd.f32 %v3234_v26, %v3218_v47  ;;  %v3251_v35 = vadd.f32 %v3235_v42, %v3219_v61  ;;  %v3252_v53 = vadd.f32 %v3236_v28, %v3220_v2  ;;  %v3253_v50 = vadd.f32 %v3237_v3, %v3221_v24 }
 0x4e8   :  { %v3254_v5 = vadd.f32 %v3238_v52, %v3222_v17  ;;  %v3255_v46 = vadd.f32 %v3239_v29, %v3223_v37  ;;  %v3256_v0 = vadd.f32 %v3240_v30, %v3224_v38  ;;  %v3257_v7 = vadd.f32 %v3241_v44, %v3225_v4 }
 0x4e9   :  { %v3258_v1 = vadd.f32 %v3242_v16, %v3226_v9  ;;  %v3259_v14 = vadd.f32 %v3243_v18, %v3227_v10  ;;  %v3260_v45 = vadd.f32 %v3244_v33, %v3228_v13  ;;  %v3261_v11 = vadd.f32 %v3245_v34, %v3229_v15 }
 0x4ea   :  { %v3262_v43 = vadd.f32 %v3246_v36, %v3230_v19  ;;  %v3263_v60 = vadd.f32 %v3247_v39, %v3231_v20  ;;  %v3264_v12 = vadd.f32 %v3248_v23, %v3232_v31  ;;  %v3265_v48 = vadd.f32 %v3249_v40, %v3233_v32 }
 0x4eb   :  { %v3266_v6 = vmax.f32 %v3250_v41, 0.0  ;;  %v3267_v49 = vmax.f32 %v3251_v35, 0.0  ;;  %v3268_v22 = vmax.f32 %v3252_v53, 0.0  ;;  %v3269_v21 = vmax.f32 %v3253_v50, 0.0 }
 0x4ec   :  { %v3270_v54 = vmax.f32 %v3254_v5, 0.0  ;;  %v3271_v55 = vmax.f32 %v3255_v46, 0.0  ;;  %v3272_v27 = vmax.f32 %v3256_v0, 0.0  ;;  %v3273_v25 = vmax.f32 %v3257_v7, 0.0 }
 0x4ed   :  { %v3274_v56 = vmax.f32 %v3258_v1, 0.0  ;;  %v3275_v57 = vmax.f32 %v3259_v14, 0.0  ;;  %v3276_v8 = vmax.f32 %v3260_v45, 0.0  ;;  %v3277_v58 = vmax.f32 %v3261_v11, 0.0  ;;  %3282 = vst [vmem:[#allocation6] sm:$0xff] %v3266_v6  ;;  %3283 = vst [vmem:[#allocation6 + $0x8] sm:$0xff] %v3267_v49 }
 0x4ee   :  { %3284 = vst [vmem:[#allocation6 + $0x10] sm:$0xff] %v3268_v22  ;;  %3285 = vst [vmem:[#allocation6 + $0x18] sm:$0xff] %v3269_v21  ;;  %v3278_v51 = vmax.f32 %v3262_v43, 0.0  ;;  %v3279_v59 = vmax.f32 %v3263_v60, 0.0  ;;  %v3280_v62 = vmax.f32 %v3264_v12, 0.0  ;;  %v3281_v63 = vmax.f32 %v3265_v48, 0.0 }
 0x4ef   :  { %3286 = vst [vmem:[#allocation6 + $0x20] sm:$0xff] %v3270_v54  ;;  %3287 = vst [vmem:[#allocation6 + $0x28] sm:$0xff] %v3271_v55 }
 0x4f0   :  { %3288 = vst [vmem:[#allocation6 + $0x30] sm:$0xff] %v3272_v27  ;;  %3289 = vst [vmem:[#allocation6 + $0x38] sm:$0xff] %v3273_v25 }
 0x4f1   :  { %3290 = vst [vmem:[#allocation6 + $0x40] sm:$0xff] %v3274_v56  ;;  %3291 = vst [vmem:[#allocation6 + $0x48] sm:$0xff] %v3275_v57 }
 0x4f2   :  { %3292 = vst [vmem:[#allocation6 + $0x50] sm:$0xff] %v3276_v8  ;;  %3293 = vst [vmem:[#allocation6 + $0x58] sm:$0xff] %v3277_v58 }
 0x4f3   :  { %3294 = vst [vmem:[#allocation6 + $0x60] sm:$0xff] %v3278_v51  ;;  %3295 = vst [vmem:[#allocation6 + $0x68] sm:$0xff] %v3279_v59 }
 0x4f4   :  { %3296 = vst [vmem:[#allocation6 + $0x70] sm:$0xff] %v3280_v62  ;;  %3297 = vst [vmem:[#allocation6 + $0x78] sm:$0xff] %v3281_v63 }
 0x4f5   :  { %4451 = shalt.err (!%p4448_p12)
}
 0x4f6   :  { %s4452_s14 = scalar_lea.hbm %s4994_s10, 2048 }
 0x4f7   :  { %p4453_p13 = scmp.ne.s32.totalorder %s4994_s10, %s4452_s14  ;;  %p4456_p0 = scmp.lt.u32.totalorder %s4452_s14, %s4994_s10 }
 0x4f9   :  { %p4458_p1 = pnand %p4456_p0, %p4453_p13 }
 0x4fb   :  { %4461 = shalt.err (!%p4458_p1)
}
 0x4fc   :  { %s4471_s19 = smov 128   ;;  %s4472_s20 = smov 8  }
 0x4fd   :  { %3309 = dma.vmem_to_hbm [thread:$0]  %s3304_s1, 2048, %s4994_s10, [#allocation5], %s4471_s19, %s4471_s19, %s4472_s20  }
 0x4fe   :  { %4464 = dma.done.wait [#allocation5], 2048  }
 0x4ff   :  { %4465 = vsyncadd [#allocation5], 4294965248 }
 0x500   :  { %3313 = vsyncpa [#allocation4], 1 }
 0x501   :  { %3314 = vsyncpa [#allocation5], 1 }

</bundles_post_ra>
